<compile_context>
chip_gen: v7x
topology: tpu7x:2x2x1
jax: 0.10.0
libtpu: 0.0.40
codegen_flags: <defaults>
</compile_context>

<pallas_src>
import numpy as np
import jax
import jax.numpy as jnp
from jax import lax
from jax.experimental import pallas as pl
from jax.experimental.pallas import tpu as pltpu

VMEM_SPEC = pl.BlockSpec(memory_space=pltpu.MemorySpace.VMEM)
_VMEM_LIMIT = 48 * 1024 * 1024


# ---------------------------------------------------------------------------
# Fused multi-layer bidirectional RNN stack (GRU or LSTM), packed-seq semantics
# ---------------------------------------------------------------------------
def _make_birnn_stack_kernel(cell_type, n_layers, emit_final, T, B, H):
    """Builds a kernel for an n_layers-deep bidirectional RNN stack.

    Ref order: x2d (T*B, D0) time-major rows, lens (B, 1) int32,
    then per layer: wi_cat (D_l, 2G), bi_cat (1, 2G), wh_blk (2H, 2G), bh_cat (1, 2G)
    with columns laid out [forward G | backward G] (wh_blk is block-diagonal).
    Outputs: full sequence as two (T, B, H) refs (fwd, bwd), or the per-row final
    states (hidden at t = len-1, packed-sequence style) as one (B, 2H) ref.
    Scratch (n_layers > 1): act_f / act_b (T*B, H) inter-layer activations in VMEM.
    """
    n_gates = 3 if cell_type == "gru" else 4
    G = n_gates * H

    def kernel(*refs):
        x_ref, len_ref = refs[0], refs[1]
        w_refs = refs[2:2 + 4 * n_layers]
        pos = 2 + 4 * n_layers
        if emit_final:
            out_ref = refs[pos]
            out_f_ref = out_b_ref = None
            pos += 1
        else:
            out_f_ref, out_b_ref = refs[pos], refs[pos + 1]
            pos += 2
        if n_layers > 1:
            act_f_ref, act_b_ref = refs[pos], refs[pos + 1]

        lens = len_ref[...]                                   # (B, 1) int32

        for l in range(n_layers):
            # per-layer weights: read ONCE, outside the time loop
            wi = w_refs[4 * l][...]                           # (D_l, 2G)
            bi = w_refs[4 * l + 1][...]                       # (1, 2G)
            wh = w_refs[4 * l + 2][...]                       # (2H, 2G) block-diag
            bh = w_refs[4 * l + 3][...]                       # (1, 2G)

            # --- hoisted input->hidden projection: one big MXU matmul per layer ---
            if l == 0:
                inp = x_ref[...]                              # (T*B, D0)
            else:
                inp = jnp.concatenate([act_f_ref[...], act_b_ref[...]], axis=1)
            gi_all = jnp.dot(inp, wi,
                             preferred_element_type=jnp.float32) + bi   # (T*B, 2G)

            is_last = l == n_layers - 1
            write_seq = (not is_last) or (not emit_final)

            h_cat = jnp.zeros((B, 2 * H), jnp.float32)        # [h_fwd | h_bwd]
            if cell_type == "lstm":
                c_cat = jnp.zeros((B, 2 * H), jnp.float32)
            if is_last and emit_final:
                acc_f = jnp.zeros((B, H), jnp.float32)
                acc_b = jnp.zeros((B, H), jnp.float32)

            # time loop: both directions fused, fully unrolled (short static T)
            for i in range(T):
                tf, tb = i, T - 1 - i
                gi_f = gi_all[tf * B:(tf + 1) * B, 0:G]
                gi_b = gi_all[tb * B:(tb + 1) * B, G:2 * G]
                # fused fwd+bwd recurrent matmul (block-diagonal Wh)
                gh = jnp.dot(h_cat, wh, preferred_element_type=jnp.float32) + bh
                gh_f, gh_b = gh[:, 0:G], gh[:, G:2 * G]
                h_f, h_b = h_cat[:, 0:H], h_cat[:, H:2 * H]
                valid_f = tf < lens                           # (B, 1) bool
                valid_b = tb < lens

                if cell_type == "gru":
                    def gru_step(gi_d, gh_d, h_d):
                        r = jax.nn.sigmoid(gi_d[:, 0:H] + gh_d[:, 0:H])
                        z = jax.nn.sigmoid(gi_d[:, H:2 * H] + gh_d[:, H:2 * H])
                        n = jnp.tanh(gi_d[:, 2 * H:3 * H] + r * gh_d[:, 2 * H:3 * H])
                        return (1.0 - z) * n + z * h_d

                    hf_new = jnp.where(valid_f, gru_step(gi_f, gh_f, h_f), h_f)
                    hb_new = jnp.where(valid_b, gru_step(gi_b, gh_b, h_b), 0.0)
                    h_cat = jnp.concatenate([hf_new, hb_new], axis=1)
                else:
                    c_f, c_b = c_cat[:, 0:H], c_cat[:, H:2 * H]

                    def lstm_step(gi_d, gh_d, c_d):
                        g = gi_d + gh_d
                        i_g = jax.nn.sigmoid(g[:, 0:H])
                        f_g = jax.nn.sigmoid(g[:, H:2 * H])
                        g_g = jnp.tanh(g[:, 2 * H:3 * H])
                        o_g = jax.nn.sigmoid(g[:, 3 * H:4 * H])
                        c_new = f_g * c_d + i_g * g_g
                        return o_g * jnp.tanh(c_new), c_new

                    hf_c, cf_c = lstm_step(gi_f, gh_f, c_f)
                    hb_c, cb_c = lstm_step(gi_b, gh_b, c_b)
                    hf_new = jnp.where(valid_f, hf_c, h_f)    # carry-hold past len
                    cf_new = jnp.where(valid_f, cf_c, c_f)
                    hb_new = jnp.where(valid_b, hb_c, 0.0)    # reset: bwd starts at len-1
                    cb_new = jnp.where(valid_b, cb_c, 0.0)
                    h_cat = jnp.concatenate([hf_new, hb_new], axis=1)
                    c_cat = jnp.concatenate([cf_new, cb_new], axis=1)

                if write_seq:
                    out_f_t = jnp.where(valid_f, hf_new, 0.0)  # zero-pad like pad_packed
                    if is_last:
                        out_f_ref[tf] = out_f_t
                        out_b_ref[tb] = hb_new
                    else:
                        act_f_ref[tf * B:(tf + 1) * B, :] = out_f_t
                        act_b_ref[tb * B:(tb + 1) * B, :] = hb_new
                if is_last and emit_final:
                    acc_f = jnp.where(tf == lens - 1, hf_new, acc_f)
                    acc_b = jnp.where(tb == lens - 1, hb_new, acc_b)

            if is_last and emit_final:
                out_ref[...] = jnp.concatenate([acc_f, acc_b], axis=1)

    return kernel


def _fuse_bidir_layer_params(layer, n_gates):
    """[wif, whf, bif, bhf, wib, whb, bib, bhb] -> (wi_cat, bi_cat, wh_blkdiag, bh_cat)."""
    wif, whf, bif, bhf, wib, whb, bib, bhb = layer
    H = whf.shape[0]
    G = n_gates * H
    wi_cat = jnp.concatenate([wif, wib], axis=1)                  # (D, 2G)
    bi_cat = jnp.concatenate([bif, bib], axis=1)                  # (1, 2G)
    wh_blk = jnp.zeros((2 * H, 2 * G), jnp.float32)
    wh_blk = wh_blk.at[:H, :G].set(whf).at[H:, G:].set(whb)       # block diagonal
    bh_cat = jnp.concatenate([bhf, bhb], axis=1)                  # (1, 2G)
    return (wi_cat, bi_cat, wh_blk, bh_cat)


def _run_birnn_stack(cell_type, emit_final, x_tm, lens, fused_layers):
    """x_tm: (T, B, D0) time-major; lens: (B, 1) int32."""
    T, B, D0 = x_tm.shape
    n_layers = len(fused_layers)
    n_gates = 3 if cell_type == "gru" else 4
    two_g = fused_layers[0][0].shape[1]
    H = two_g // (2 * n_gates)

    kernel = _make_birnn_stack_kernel(cell_type, n_layers, emit_final, T, B, H)
    flat_w = [w for layer in fused_layers for w in layer]
    x_2d = x_tm.reshape(T * B, D0)        # free metadata reshape; rows stay time-major

    if emit_final:
        out_shape = jax.ShapeDtypeStruct((B, 2 * H), jnp.float32)
        out_specs = VMEM_SPEC
    else:
        out_shape = (jax.ShapeDtypeStruct((T, B, H), jnp.float32),
                     jax.ShapeDtypeStruct((T, B, H), jnp.float32))
        out_specs = (VMEM_SPEC, VMEM_SPEC)

    scratch = []
    if n_layers > 1:
        scratch = [pltpu.VMEM((T * B, H), jnp.float32),
                   pltpu.VMEM((T * B, H), jnp.float32)]

    flops = 0
    d_in = D0
    for _ in range(n_layers):
        flops += 2 * T * B * two_g * (d_in + 2 * H)
        d_in = 2 * H
    transcend = 4 * n_gates * T * B * H * n_layers
    nbytes = 4 * (T * B * (D0 + 4 * H) + sum(int(np.prod(w.shape)) for w in flat_w))

    return pl.pallas_call(
        kernel,
        out_shape=out_shape,
        in_specs=[VMEM_SPEC] * (2 + len(flat_w)),
        out_specs=out_specs,
        scratch_shapes=scratch,
        compiler_params=pltpu.CompilerParams(vmem_limit_bytes=_VMEM_LIMIT),
        cost_estimate=pl.CostEstimate(flops=int(flops),
                                      transcendentals=int(transcend),
                                      bytes_accessed=int(nbytes)),
    )(x_2d, lens, *flat_w)


# ---------------------------------------------------------------------------
# Selection head: sel_att + masked softmax + weighted sum + sel_out_K /
# sel_out_col + Tanh + sel_out Linear + column masking (time-major h_enc)
# ---------------------------------------------------------------------------
def _sel_head_kernel(hf_ref, hb_ref, ecol_ref, xlen_ref, colnum_ref,
                     watt_ref, batt_ref, wk_ref, bk_ref,
                     wc_ref, bc_ref, wout_ref, bout_ref,
                     score_ref):
    T, B, H = hf_ref.shape
    Nh = 2 * H
    h = jnp.concatenate([hf_ref[...], hb_ref[...]], axis=-1)      # (T, B, Nh)
    ec = ecol_ref[...]                                            # (B, C, Nh)
    C = ec.shape[1]
    xlen = xlen_ref[...]                                          # (1, B) int32
    colnum = colnum_ref[...]                                      # (B, 1) int32

    # att_val = sel_att(h_enc).squeeze()  (rank-1 projection kept on VPU + lane
    # reduce; an (Nh,1) MXU matmul would need a (T*B,1)->(T,B) relayout)
    w_att = watt_ref[...].reshape(1, 1, Nh)
    att_val = jnp.sum(h * w_att, axis=-1) + batt_ref[...]         # (T, B)
    t_idx = lax.broadcasted_iota(jnp.int32, (T, B), 0)
    att_val = jnp.where(t_idx < xlen, att_val, -100.0)

    # softmax over tokens (nn.Softmax() on 2D -> over the token axis)
    m = jnp.max(att_val, axis=0, keepdims=True)
    e = jnp.exp(att_val - m)
    att = e * pl.reciprocal(jnp.sum(e, axis=0, keepdims=True), approx=True)

    # K_sel = sum_t att[t,b] * h_enc[t,b,:]
    k_sel = jnp.sum(att[:, :, None] * h, axis=0)                  # (B, Nh)

    # sel_out_K(K_sel_expand) + sel_out_col(e_col)  (MXU matmuls)
    proj_k = jnp.dot(k_sel, wk_ref[...],
                     preferred_element_type=jnp.float32) + bk_ref[...]          # (B, Nh)
    proj_c = (jnp.dot(ec.reshape(B * C, Nh), wc_ref[...],
                      preferred_element_type=jnp.float32) + bc_ref[...]).reshape(B, C, Nh)
    hsum = jnp.tanh(proj_k[:, None, :] + proj_c)                  # (B, C, Nh)

    # sel_out: Linear(Nh, 1) -> (B, C), then column masking
    w_out = wout_ref[...].reshape(1, 1, Nh)
    score = jnp.sum(hsum * w_out, axis=-1) + bout_ref[...]        # (B, C)
    c_idx = lax.broadcasted_iota(jnp.int32, (B, C), 1)
    score_ref[...] = jnp.where(c_idx < colnum, score, -100.0)


def sel_head(h_f, h_b, e_col, xlen_1b, colnum_b1, head_params):
    T, B, H = h_f.shape
    C = e_col.shape[1]
    Nh = 2 * H
    flops = 2 * (B * Nh * Nh + B * C * Nh * Nh) + 4 * T * B * Nh + 4 * B * C * Nh
    return pl.pallas_call(
        _sel_head_kernel,
        out_shape=jax.ShapeDtypeStruct((B, C), jnp.float32),
        in_specs=[VMEM_SPEC] * 13,
        out_specs=VMEM_SPEC,
        compiler_params=pltpu.CompilerParams(vmem_limit_bytes=_VMEM_LIMIT),
        cost_estimate=pl.CostEstimate(
            flops=int(flops),
            transcendentals=int(T * B + B * C * Nh),
            bytes_accessed=int(4 * (2 * T * B * H + B * C * Nh + B * C + 2 * Nh * Nh))),
    )(h_f, h_b, e_col, xlen_1b, colnum_b1, *head_params)


# ---------------------------------------------------------------------------
# JAX glue
# ---------------------------------------------------------------------------
def build_e_col(name_out, col_len):
    """Pack flat (N_total, N_h) name encodings into (B, max_col, N_h) with one
    static-index gather + mask (replaces the per-batch .at[].set loop)."""
    B = len(col_len)
    max_col = max(col_len)
    idx = np.zeros((B, max_col), np.int32)
    msk = np.zeros((B, max_col, 1), np.float32)
    st = 0
    for b, cur in enumerate(col_len):
        idx[b, :cur] = np.arange(st, st + cur)
        msk[b, :cur, 0] = 1.0
        st += cur
    return jnp.take(name_out, jnp.asarray(idx), axis=0) * jnp.asarray(msk)


def sel_predictor_forward(x_emb_var, x_len, col_inp_var, col_name_len, col_len,
                          col_num, gru_params, lstm_params, head_params, N_h):
    B = x_emb_var.shape[0]
    xlen_b1 = jnp.asarray(x_len, jnp.int32).reshape(B, 1)
    xlen_1b = jnp.asarray(x_len, jnp.int32).reshape(1, B)
    colnum_b1 = jnp.asarray(col_num, jnp.int32).reshape(B, 1)

    # Column-name encoder: fused N_depth-layer BiLSTM emitting only final states.
    n_names = col_inp_var.shape[0]
    name_lens = jnp.asarray(col_name_len, jnp.int32).reshape(n_names, 1)
    col_tm = jnp.transpose(col_inp_var, (1, 0, 2))          # (T_name, N, N_word)
    lstm_fused = [_fuse_bidir_layer_params(p, n_gates=4) for p in lstm_params]
    name_out = _run_birnn_stack("lstm", True, col_tm, name_lens, lstm_fused)  # (N, N_h)
    e_col = build_e_col(name_out, col_len)                  # (B, C, N_h)

    # Question encoder: fused N_depth-layer BiGRU, full time-major sequence output.
    x_tm = jnp.transpose(x_emb_var, (1, 0, 2))              # (T, B, N_word)
    gru_fused = [_fuse_bidir_layer_params(p, n_gates=3) for p in gru_params]
    h_f, h_b = _run_birnn_stack("gru", False, x_tm, xlen_b1, gru_fused)  # (T,B,H) x2

    return sel_head(h_f, h_b, e_col, xlen_1b, colnum_b1, head_params)


# ---------------------------------------------------------------------------
# Deterministic parameter construction + demo
# ---------------------------------------------------------------------------
if __name__ == "__main__":
    N_word, N_h, N_depth = 32, 32, 2
    H = N_h // 2
    B = 2
    max_x_len = 8
    x_len = [8, 6]
    col_len = [3, 2]
    col_num = col_len
    total_cols = sum(col_len)
    max_name_len = 4
    col_name_len = [2, 3, 4, 1, 2]

    keys = iter(jax.random.split(jax.random.PRNGKey(0), 64))

    def rnd(shape, scale=0.25):
        return jax.random.uniform(next(keys), shape, jnp.float32, -1.0, 1.0) * scale

    # Bidirectional GRU (sel_lstm): per layer [wif, whf, bif, bhf, wib, whb, bib, bhb]
    # (Linear-style weights already transposed to (in, out)).
    gru_params = []
    d_in = N_word
    for _ in range(N_depth):
        layer = []
        for _direction in range(2):
            layer += [rnd((d_in, 3 * H)), rnd((H, 3 * H)),
                      rnd((1, 3 * H)), rnd((1, 3 * H))]
        gru_params.append(layer)
        d_in = 2 * H

    # Bidirectional LSTM (sel_col_name_enc)
    lstm_params = []
    d_in = N_word
    for _ in range(N_depth):
        layer = []
        for _direction in range(2):
            layer += [rnd((d_in, 4 * H)), rnd((H, 4 * H)),
                      rnd((1, 4 * H)), rnd((1, 4 * H))]
        lstm_params.append(layer)
        d_in = 2 * H

    # Selection head params
    w_att = rnd((1, N_h))      # sel_att: Linear(N_h, 1)
    b_att = rnd((1, 1))
    w_k = rnd((N_h, N_h))      # sel_out_K
    b_k = rnd((1, N_h))
    w_c = rnd((N_h, N_h))      # sel_out_col
    b_c = rnd((1, N_h))
    w_out = rnd((1, N_h))      # sel_out[1]: Linear(N_h, 1)
    b_out = rnd((1, 1))
    head_params = [w_att, b_att, w_k, b_k, w_c, b_c, w_out, b_out]

    # Inputs
    x_emb_var = rnd((B, max_x_len, N_word), scale=1.0)
    col_inp_var = rnd((total_cols, max_name_len, N_word), scale=1.0)

    sel_score = sel_predictor_forward(x_emb_var, x_len, col_inp_var, col_name_len,
                                      col_len, col_num, gru_params, lstm_params,
                                      head_params, N_h)
    sel_score = jax.block_until_ready(sel_score)

    assert sel_score.shape == (B, max(col_num))
    assert bool(jnp.all(jnp.isfinite(sel_score)))
    print("KERNEL_OK")
</pallas_src>

<mosaic_0001>
module attributes {stable_mosaic.version = 11 : i64} {
  func.func @kernel(%arg0: memref<20x32xf32, #tpu.memory_space<vmem>>, %arg1: memref<5x1xi32, #tpu.memory_space<vmem>>, %arg2: memref<32x128xf32, #tpu.memory_space<vmem>>, %arg3: memref<1x128xf32, #tpu.memory_space<vmem>>, %arg4: memref<32x128xf32, #tpu.memory_space<vmem>>, %arg5: memref<1x128xf32, #tpu.memory_space<vmem>>, %arg6: memref<32x128xf32, #tpu.memory_space<vmem>>, %arg7: memref<1x128xf32, #tpu.memory_space<vmem>>, %arg8: memref<32x128xf32, #tpu.memory_space<vmem>>, %arg9: memref<1x128xf32, #tpu.memory_space<vmem>>, %arg10: memref<5x32xf32, #tpu.memory_space<vmem>>, %arg11: memref<20x16xf32, #tpu.memory_space<vmem>>, %arg12: memref<20x16xf32, #tpu.memory_space<vmem>>) attributes {dimension_semantics = [], scalar_prefetch = 0 : i64, scratch_operands = 2 : i64, tpu.core_type = #tpu.core_type<tc>} {
    %c0 = arith.constant 0 : index
    %c0_0 = arith.constant 0 : index
    %0 = vector.load %arg1[%c0, %c0_0] : memref<5x1xi32, #tpu.memory_space<vmem>>, vector<5x1xi32>
    %c0_1 = arith.constant 0 : index
    %c0_2 = arith.constant 0 : index
    %1 = vector.load %arg2[%c0_1, %c0_2] : memref<32x128xf32, #tpu.memory_space<vmem>>, vector<32x128xf32>
    %c0_3 = arith.constant 0 : index
    %c0_4 = arith.constant 0 : index
    %2 = vector.load %arg3[%c0_3, %c0_4] : memref<1x128xf32, #tpu.memory_space<vmem>>, vector<1x128xf32>
    %c0_5 = arith.constant 0 : index
    %c0_6 = arith.constant 0 : index
    %3 = vector.load %arg4[%c0_5, %c0_6] : memref<32x128xf32, #tpu.memory_space<vmem>>, vector<32x128xf32>
    %c0_7 = arith.constant 0 : index
    %c0_8 = arith.constant 0 : index
    %4 = vector.load %arg5[%c0_7, %c0_8] : memref<1x128xf32, #tpu.memory_space<vmem>>, vector<1x128xf32>
    %c0_9 = arith.constant 0 : index
    %c0_10 = arith.constant 0 : index
    %5 = vector.load %arg0[%c0_9, %c0_10] : memref<20x32xf32, #tpu.memory_space<vmem>>, vector<20x32xf32>
    %cst = arith.constant dense<0.000000e+00> : vector<20x128xf32>
    %6 = tpu.matmul %5, %1, %cst {dimension_numbers = #tpu.dot_dimension_numbers<[1], [0], [0], [1], [0, 0, 1, 1], [], []>} : vector<20x32xf32>, vector<32x128xf32>, vector<20x128xf32> -> vector<20x128xf32>
    %7 = vector.broadcast %2 : vector<1x128xf32> to vector<20x128xf32>
    %8 = arith.addf %6, %7 : vector<20x128xf32>
    %cst_11 = arith.constant 0.000000e+00 : f32
    %9 = vector.broadcast %cst_11 : f32 to vector<5x32xf32>
    %cst_12 = arith.constant 0.000000e+00 : f32
    %10 = vector.broadcast %cst_12 : f32 to vector<5x32xf32>
    %11 = vector.extract_strided_slice %8 {offsets = [0, 0], sizes = [5, 64], strides = [1, 1]} : vector<20x128xf32> to vector<5x64xf32>
    %12 = vector.extract_strided_slice %8 {offsets = [15, 64], sizes = [5, 64], strides = [1, 1]} : vector<20x128xf32> to vector<5x64xf32>
    %cst_13 = arith.constant dense<0.000000e+00> : vector<5x128xf32>
    %13 = tpu.matmul %9, %3, %cst_13 {dimension_numbers = #tpu.dot_dimension_numbers<[1], [0], [0], [1], [0, 0, 1, 1], [], []>} : vector<5x32xf32>, vector<32x128xf32>, vector<5x128xf32> -> vector<5x128xf32>
    %14 = vector.broadcast %4 : vector<1x128xf32> to vector<5x128xf32>
    %15 = arith.addf %13, %14 : vector<5x128xf32>
    %16 = vector.extract_strided_slice %15 {offsets = [0, 0], sizes = [5, 64], strides = [1, 1]} : vector<5x128xf32> to vector<5x64xf32>
    %17 = vector.extract_strided_slice %15 {offsets = [0, 64], sizes = [5, 64], strides = [1, 1]} : vector<5x128xf32> to vector<5x64xf32>
    %18 = vector.extract_strided_slice %9 {offsets = [0, 0], sizes = [5, 16], strides = [1, 1]} : vector<5x32xf32> to vector<5x16xf32>
    %c0_i32 = arith.constant 0 : i32
    %19 = vector.broadcast %c0_i32 : i32 to vector<5x1xi32>
    %20 = arith.cmpi sgt, %0, %19 : vector<5x1xi32>
    %c3_i32 = arith.constant 3 : i32
    %21 = vector.broadcast %c3_i32 : i32 to vector<5x1xi32>
    %22 = arith.cmpi sgt, %0, %21 : vector<5x1xi32>
    %23 = vector.extract_strided_slice %10 {offsets = [0, 0], sizes = [5, 16], strides = [1, 1]} : vector<5x32xf32> to vector<5x16xf32>
    %24 = vector.extract_strided_slice %10 {offsets = [0, 16], sizes = [5, 16], strides = [1, 1]} : vector<5x32xf32> to vector<5x16xf32>
    %25 = arith.addf %11, %16 : vector<5x64xf32>
    %26 = vector.extract_strided_slice %25 {offsets = [0, 0], sizes = [5, 16], strides = [1, 1]} : vector<5x64xf32> to vector<5x16xf32>
    %27 = arith.negf %26 : vector<5x16xf32>
    %28 = math.exp %27 : vector<5x16xf32>
    %cst_14 = arith.constant 1.000000e+00 : f32
    %29 = vector.broadcast %cst_14 : f32 to vector<5x16xf32>
    %30 = arith.addf %29, %28 : vector<5x16xf32>
    %31 = arith.divf %29, %30 : vector<5x16xf32>
    %32 = vector.extract_strided_slice %25 {offsets = [0, 16], sizes = [5, 16], strides = [1, 1]} : vector<5x64xf32> to vector<5x16xf32>
    %33 = arith.negf %32 : vector<5x16xf32>
    %34 = math.exp %33 : vector<5x16xf32>
    %cst_15 = arith.constant 1.000000e+00 : f32
    %35 = vector.broadcast %cst_15 : f32 to vector<5x16xf32>
    %36 = arith.addf %35, %34 : vector<5x16xf32>
    %37 = arith.divf %35, %36 : vector<5x16xf32>
    %38 = vector.extract_strided_slice %25 {offsets = [0, 32], sizes = [5, 16], strides = [1, 1]} : vector<5x64xf32> to vector<5x16xf32>
    %39 = math.tanh %38 : vector<5x16xf32>
    %40 = vector.extract_strided_slice %25 {offsets = [0, 48], sizes = [5, 16], strides = [1, 1]} : vector<5x64xf32> to vector<5x16xf32>
    %41 = arith.negf %40 : vector<5x16xf32>
    %42 = math.exp %41 : vector<5x16xf32>
    %cst_16 = arith.constant 1.000000e+00 : f32
    %43 = vector.broadcast %cst_16 : f32 to vector<5x16xf32>
    %44 = arith.addf %43, %42 : vector<5x16xf32>
    %45 = arith.divf %43, %44 : vector<5x16xf32>
    %46 = arith.mulf %37, %23 : vector<5x16xf32>
    %47 = arith.mulf %31, %39 : vector<5x16xf32>
    %48 = arith.addf %46, %47 : vector<5x16xf32>
    %49 = math.tanh %48 : vector<5x16xf32>
    %50 = arith.mulf %45, %49 : vector<5x16xf32>
    %51 = arith.addf %12, %17 : vector<5x64xf32>
    %52 = vector.extract_strided_slice %51 {offsets = [0, 0], sizes = [5, 16], strides = [1, 1]} : vector<5x64xf32> to vector<5x16xf32>
    %53 = arith.negf %52 : vector<5x16xf32>
    %54 = math.exp %53 : vector<5x16xf32>
    %cst_17 = arith.constant 1.000000e+00 : f32
    %55 = vector.broadcast %cst_17 : f32 to vector<5x16xf32>
    %56 = arith.addf %55, %54 : vector<5x16xf32>
    %57 = arith.divf %55, %56 : vector<5x16xf32>
    %58 = vector.extract_strided_slice %51 {offsets = [0, 16], sizes = [5, 16], strides = [1, 1]} : vector<5x64xf32> to vector<5x16xf32>
    %59 = arith.negf %58 : vector<5x16xf32>
    %60 = math.exp %59 : vector<5x16xf32>
    %cst_18 = arith.constant 1.000000e+00 : f32
    %61 = vector.broadcast %cst_18 : f32 to vector<5x16xf32>
    %62 = arith.addf %61, %60 : vector<5x16xf32>
    %63 = arith.divf %61, %62 : vector<5x16xf32>
    %64 = vector.extract_strided_slice %51 {offsets = [0, 32], sizes = [5, 16], strides = [1, 1]} : vector<5x64xf32> to vector<5x16xf32>
    %65 = math.tanh %64 : vector<5x16xf32>
    %66 = vector.extract_strided_slice %51 {offsets = [0, 48], sizes = [5, 16], strides = [1, 1]} : vector<5x64xf32> to vector<5x16xf32>
    %67 = arith.negf %66 : vector<5x16xf32>
    %68 = math.exp %67 : vector<5x16xf32>
    %cst_19 = arith.constant 1.000000e+00 : f32
    %69 = vector.broadcast %cst_19 : f32 to vector<5x16xf32>
    %70 = arith.addf %69, %68 : vector<5x16xf32>
    %71 = arith.divf %69, %70 : vector<5x16xf32>
    %72 = arith.mulf %63, %24 : vector<5x16xf32>
    %73 = arith.mulf %57, %65 : vector<5x16xf32>
    %74 = arith.addf %72, %73 : vector<5x16xf32>
    %75 = math.tanh %74 : vector<5x16xf32>
    %76 = arith.mulf %71, %75 : vector<5x16xf32>
    %77 = vector.shape_cast %20 : vector<5x1xi1> to vector<5x1xi1>
    %78 = vector.broadcast %77 : vector<5x1xi1> to vector<5x16xi1>
    %79 = arith.select %78, %50, %18 : vector<5x16xi1>, vector<5x16xf32>
    %80 = vector.shape_cast %20 : vector<5x1xi1> to vector<5x1xi1>
    %81 = vector.broadcast %80 : vector<5x1xi1> to vector<5x16xi1>
    %82 = arith.select %81, %48, %23 : vector<5x16xi1>, vector<5x16xf32>
    %cst_20 = arith.constant 0.000000e+00 : f32
    %83 = vector.shape_cast %22 : vector<5x1xi1> to vector<5x1xi1>
    %84 = vector.broadcast %83 : vector<5x1xi1> to vector<5x16xi1>
    %85 = vector.broadcast %cst_20 : f32 to vector<5x16xf32>
    %86 = arith.select %84, %76, %85 : vector<5x16xi1>, vector<5x16xf32>
    %cst_21 = arith.constant 0.000000e+00 : f32
    %87 = vector.shape_cast %22 : vector<5x1xi1> to vector<5x1xi1>
    %88 = vector.broadcast %87 : vector<5x1xi1> to vector<5x16xi1>
    %89 = vector.broadcast %cst_21 : f32 to vector<5x16xf32>
    %90 = arith.select %88, %74, %89 : vector<5x16xi1>, vector<5x16xf32>
    %91 = tpu.concatenate %79, %86 in 1 : vector<5x16xf32>, vector<5x16xf32> -> vector<5x32xf32>
    %92 = tpu.concatenate %82, %90 in 1 : vector<5x16xf32>, vector<5x16xf32> -> vector<5x32xf32>
    %cst_22 = arith.constant 0.000000e+00 : f32
    %93 = vector.shape_cast %20 : vector<5x1xi1> to vector<5x1xi1>
    %94 = vector.broadcast %93 : vector<5x1xi1> to vector<5x16xi1>
    %95 = vector.broadcast %cst_22 : f32 to vector<5x16xf32>
    %96 = arith.select %94, %79, %95 : vector<5x16xi1>, vector<5x16xf32>
    %c0_23 = arith.constant 0 : index
    %c0_24 = arith.constant 0 : index
    %97 = vector.load %arg11[%c0_23, %c0_24] : memref<20x16xf32, #tpu.memory_space<vmem>>, vector<5x16xf32>
    tpu.vector_store %arg11[%c0_23, %c0_24], %96 {strides = array<i32>} : memref<20x16xf32, #tpu.memory_space<vmem>>, vector<5x16xf32>,
    %c15 = arith.constant 15 : index
    %c0_25 = arith.constant 0 : index
    %98 = vector.load %arg12[%c15, %c0_25] : memref<20x16xf32, #tpu.memory_space<vmem>>, vector<5x16xf32>
    tpu.vector_store %arg12[%c15, %c0_25], %86 {strides = array<i32>} : memref<20x16xf32, #tpu.memory_space<vmem>>, vector<5x16xf32>,
    %99 = vector.extract_strided_slice %8 {offsets = [5, 0], sizes = [5, 64], strides = [1, 1]} : vector<20x128xf32> to vector<5x64xf32>
    %100 = vector.extract_strided_slice %8 {offsets = [10, 64], sizes = [5, 64], strides = [1, 1]} : vector<20x128xf32> to vector<5x64xf32>
    %cst_26 = arith.constant dense<0.000000e+00> : vector<5x128xf32>
    %101 = tpu.matmul %91, %3, %cst_26 {dimension_numbers = #tpu.dot_dimension_numbers<[1], [0], [0], [1], [0, 0, 1, 1], [], []>} : vector<5x32xf32>, vector<32x128xf32>, vector<5x128xf32> -> vector<5x128xf32>
    %102 = vector.broadcast %4 : vector<1x128xf32> to vector<5x128xf32>
    %103 = arith.addf %101, %102 : vector<5x128xf32>
    %104 = vector.extract_strided_slice %103 {offsets = [0, 0], sizes = [5, 64], strides = [1, 1]} : vector<5x128xf32> to vector<5x64xf32>
    %105 = vector.extract_strided_slice %103 {offsets = [0, 64], sizes = [5, 64], strides = [1, 1]} : vector<5x128xf32> to vector<5x64xf32>
    %106 = vector.extract_strided_slice %91 {offsets = [0, 0], sizes = [5, 16], strides = [1, 1]} : vector<5x32xf32> to vector<5x16xf32>
    %c1_i32 = arith.constant 1 : i32
    %107 = vector.broadcast %c1_i32 : i32 to vector<5x1xi32>
    %108 = arith.cmpi sgt, %0, %107 : vector<5x1xi32>
    %c2_i32 = arith.constant 2 : i32
    %109 = vector.broadcast %c2_i32 : i32 to vector<5x1xi32>
    %110 = arith.cmpi sgt, %0, %109 : vector<5x1xi32>
    %111 = vector.extract_strided_slice %92 {offsets = [0, 0], sizes = [5, 16], strides = [1, 1]} : vector<5x32xf32> to vector<5x16xf32>
    %112 = vector.extract_strided_slice %92 {offsets = [0, 16], sizes = [5, 16], strides = [1, 1]} : vector<5x32xf32> to vector<5x16xf32>
    %113 = arith.addf %99, %104 : vector<5x64xf32>
    %114 = vector.extract_strided_slice %113 {offsets = [0, 0], sizes = [5, 16], strides = [1, 1]} : vector<5x64xf32> to vector<5x16xf32>
    %115 = arith.negf %114 : vector<5x16xf32>
    %116 = math.exp %115 : vector<5x16xf32>
    %cst_27 = arith.constant 1.000000e+00 : f32
    %117 = vector.broadcast %cst_27 : f32 to vector<5x16xf32>
    %118 = arith.addf %117, %116 : vector<5x16xf32>
    %119 = arith.divf %117, %118 : vector<5x16xf32>
    %120 = vector.extract_strided_slice %113 {offsets = [0, 16], sizes = [5, 16], strides = [1, 1]} : vector<5x64xf32> to vector<5x16xf32>
    %121 = arith.negf %120 : vector<5x16xf32>
    %122 = math.exp %121 : vector<5x16xf32>
    %cst_28 = arith.constant 1.000000e+00 : f32
    %123 = vector.broadcast %cst_28 : f32 to vector<5x16xf32>
    %124 = arith.addf %123, %122 : vector<5x16xf32>
    %125 = arith.divf %123, %124 : vector<5x16xf32>
    %126 = vector.extract_strided_slice %113 {offsets = [0, 32], sizes = [5, 16], strides = [1, 1]} : vector<5x64xf32> to vector<5x16xf32>
    %127 = math.tanh %126 : vector<5x16xf32>
    %128 = vector.extract_strided_slice %113 {offsets = [0, 48], sizes = [5, 16], strides = [1, 1]} : vector<5x64xf32> to vector<5x16xf32>
    %129 = arith.negf %128 : vector<5x16xf32>
    %130 = math.exp %129 : vector<5x16xf32>
    %cst_29 = arith.constant 1.000000e+00 : f32
    %131 = vector.broadcast %cst_29 : f32 to vector<5x16xf32>
    %132 = arith.addf %131, %130 : vector<5x16xf32>
    %133 = arith.divf %131, %132 : vector<5x16xf32>
    %134 = arith.mulf %125, %111 : vector<5x16xf32>
    %135 = arith.mulf %119, %127 : vector<5x16xf32>
    %136 = arith.addf %134, %135 : vector<5x16xf32>
    %137 = math.tanh %136 : vector<5x16xf32>
    %138 = arith.mulf %133, %137 : vector<5x16xf32>
    %139 = arith.addf %100, %105 : vector<5x64xf32>
    %140 = vector.extract_strided_slice %139 {offsets = [0, 0], sizes = [5, 16], strides = [1, 1]} : vector<5x64xf32> to vector<5x16xf32>
    %141 = arith.negf %140 : vector<5x16xf32>
    %142 = math.exp %141 : vector<5x16xf32>
    %cst_30 = arith.constant 1.000000e+00 : f32
    %143 = vector.broadcast %cst_30 : f32 to vector<5x16xf32>
    %144 = arith.addf %143, %142 : vector<5x16xf32>
    %145 = arith.divf %143, %144 : vector<5x16xf32>
    %146 = vector.extract_strided_slice %139 {offsets = [0, 16], sizes = [5, 16], strides = [1, 1]} : vector<5x64xf32> to vector<5x16xf32>
    %147 = arith.negf %146 : vector<5x16xf32>
    %148 = math.exp %147 : vector<5x16xf32>
    %cst_31 = arith.constant 1.000000e+00 : f32
    %149 = vector.broadcast %cst_31 : f32 to vector<5x16xf32>
    %150 = arith.addf %149, %148 : vector<5x16xf32>
    %151 = arith.divf %149, %150 : vector<5x16xf32>
    %152 = vector.extract_strided_slice %139 {offsets = [0, 32], sizes = [5, 16], strides = [1, 1]} : vector<5x64xf32> to vector<5x16xf32>
    %153 = math.tanh %152 : vector<5x16xf32>
    %154 = vector.extract_strided_slice %139 {offsets = [0, 48], sizes = [5, 16], strides = [1, 1]} : vector<5x64xf32> to vector<5x16xf32>
    %155 = arith.negf %154 : vector<5x16xf32>
    %156 = math.exp %155 : vector<5x16xf32>
    %cst_32 = arith.constant 1.000000e+00 : f32
    %157 = vector.broadcast %cst_32 : f32 to vector<5x16xf32>
    %158 = arith.addf %157, %156 : vector<5x16xf32>
    %159 = arith.divf %157, %158 : vector<5x16xf32>
    %160 = arith.mulf %151, %112 : vector<5x16xf32>
    %161 = arith.mulf %145, %153 : vector<5x16xf32>
    %162 = arith.addf %160, %161 : vector<5x16xf32>
    %163 = math.tanh %162 : vector<5x16xf32>
    %164 = arith.mulf %159, %163 : vector<5x16xf32>
    %165 = vector.shape_cast %108 : vector<5x1xi1> to vector<5x1xi1>
    %166 = vector.broadcast %165 : vector<5x1xi1> to vector<5x16xi1>
    %167 = arith.select %166, %138, %106 : vector<5x16xi1>, vector<5x16xf32>
    %168 = vector.shape_cast %108 : vector<5x1xi1> to vector<5x1xi1>
    %169 = vector.broadcast %168 : vector<5x1xi1> to vector<5x16xi1>
    %170 = arith.select %169, %136, %111 : vector<5x16xi1>, vector<5x16xf32>
    %cst_33 = arith.constant 0.000000e+00 : f32
    %171 = vector.shape_cast %110 : vector<5x1xi1> to vector<5x1xi1>
    %172 = vector.broadcast %171 : vector<5x1xi1> to vector<5x16xi1>
    %173 = vector.broadcast %cst_33 : f32 to vector<5x16xf32>
    %174 = arith.select %172, %164, %173 : vector<5x16xi1>, vector<5x16xf32>
    %cst_34 = arith.constant 0.000000e+00 : f32
    %175 = vector.shape_cast %110 : vector<5x1xi1> to vector<5x1xi1>
    %176 = vector.broadcast %175 : vector<5x1xi1> to vector<5x16xi1>
    %177 = vector.broadcast %cst_34 : f32 to vector<5x16xf32>
    %178 = arith.select %176, %162, %177 : vector<5x16xi1>, vector<5x16xf32>
    %179 = tpu.concatenate %167, %174 in 1 : vector<5x16xf32>, vector<5x16xf32> -> vector<5x32xf32>
    %180 = tpu.concatenate %170, %178 in 1 : vector<5x16xf32>, vector<5x16xf32> -> vector<5x32xf32>
    %cst_35 = arith.constant 0.000000e+00 : f32
    %181 = vector.shape_cast %108 : vector<5x1xi1> to vector<5x1xi1>
    %182 = vector.broadcast %181 : vector<5x1xi1> to vector<5x16xi1>
    %183 = vector.broadcast %cst_35 : f32 to vector<5x16xf32>
    %184 = arith.select %182, %167, %183 : vector<5x16xi1>, vector<5x16xf32>
    %c5 = arith.constant 5 : index
    %c0_36 = arith.constant 0 : index
    %185 = vector.load %arg11[%c5, %c0_36] : memref<20x16xf32, #tpu.memory_space<vmem>>, vector<5x16xf32>
    tpu.vector_store %arg11[%c5, %c0_36], %184 {strides = array<i32>} : memref<20x16xf32, #tpu.memory_space<vmem>>, vector<5x16xf32>,
    %c10 = arith.constant 10 : index
    %c0_37 = arith.constant 0 : index
    %186 = vector.load %arg12[%c10, %c0_37] : memref<20x16xf32, #tpu.memory_space<vmem>>, vector<5x16xf32>
    tpu.vector_store %arg12[%c10, %c0_37], %174 {strides = array<i32>} : memref<20x16xf32, #tpu.memory_space<vmem>>, vector<5x16xf32>,
    %187 = vector.extract_strided_slice %8 {offsets = [10, 0], sizes = [5, 64], strides = [1, 1]} : vector<20x128xf32> to vector<5x64xf32>
    %188 = vector.extract_strided_slice %8 {offsets = [5, 64], sizes = [5, 64], strides = [1, 1]} : vector<20x128xf32> to vector<5x64xf32>
    %cst_38 = arith.constant dense<0.000000e+00> : vector<5x128xf32>
    %189 = tpu.matmul %179, %3, %cst_38 {dimension_numbers = #tpu.dot_dimension_numbers<[1], [0], [0], [1], [0, 0, 1, 1], [], []>} : vector<5x32xf32>, vector<32x128xf32>, vector<5x128xf32> -> vector<5x128xf32>
    %190 = vector.broadcast %4 : vector<1x128xf32> to vector<5x128xf32>
    %191 = arith.addf %189, %190 : vector<5x128xf32>
    %192 = vector.extract_strided_slice %191 {offsets = [0, 0], sizes = [5, 64], strides = [1, 1]} : vector<5x128xf32> to vector<5x64xf32>
    %193 = vector.extract_strided_slice %191 {offsets = [0, 64], sizes = [5, 64], strides = [1, 1]} : vector<5x128xf32> to vector<5x64xf32>
    %194 = vector.extract_strided_slice %179 {offsets = [0, 0], sizes = [5, 16], strides = [1, 1]} : vector<5x32xf32> to vector<5x16xf32>
    %c2_i32_39 = arith.constant 2 : i32
    %195 = vector.broadcast %c2_i32_39 : i32 to vector<5x1xi32>
    %196 = arith.cmpi sgt, %0, %195 : vector<5x1xi32>
    %c1_i32_40 = arith.constant 1 : i32
    %197 = vector.broadcast %c1_i32_40 : i32 to vector<5x1xi32>
    %198 = arith.cmpi sgt, %0, %197 : vector<5x1xi32>
    %199 = vector.extract_strided_slice %180 {offsets = [0, 0], sizes = [5, 16], strides = [1, 1]} : vector<5x32xf32> to vector<5x16xf32>
    %200 = vector.extract_strided_slice %180 {offsets = [0, 16], sizes = [5, 16], strides = [1, 1]} : vector<5x32xf32> to vector<5x16xf32>
    %201 = arith.addf %187, %192 : vector<5x64xf32>
    %202 = vector.extract_strided_slice %201 {offsets = [0, 0], sizes = [5, 16], strides = [1, 1]} : vector<5x64xf32> to vector<5x16xf32>
    %203 = arith.negf %202 : vector<5x16xf32>
    %204 = math.exp %203 : vector<5x16xf32>
    %cst_41 = arith.constant 1.000000e+00 : f32
    %205 = vector.broadcast %cst_41 : f32 to vector<5x16xf32>
    %206 = arith.addf %205, %204 : vector<5x16xf32>
    %207 = arith.divf %205, %206 : vector<5x16xf32>
    %208 = vector.extract_strided_slice %201 {offsets = [0, 16], sizes = [5, 16], strides = [1, 1]} : vector<5x64xf32> to vector<5x16xf32>
    %209 = arith.negf %208 : vector<5x16xf32>
    %210 = math.exp %209 : vector<5x16xf32>
    %cst_42 = arith.constant 1.000000e+00 : f32
    %211 = vector.broadcast %cst_42 : f32 to vector<5x16xf32>
    %212 = arith.addf %211, %210 : vector<5x16xf32>
    %213 = arith.divf %211, %212 : vector<5x16xf32>
    %214 = vector.extract_strided_slice %201 {offsets = [0, 32], sizes = [5, 16], strides = [1, 1]} : vector<5x64xf32> to vector<5x16xf32>
    %215 = math.tanh %214 : vector<5x16xf32>
    %216 = vector.extract_strided_slice %201 {offsets = [0, 48], sizes = [5, 16], strides = [1, 1]} : vector<5x64xf32> to vector<5x16xf32>
    %217 = arith.negf %216 : vector<5x16xf32>
    %218 = math.exp %217 : vector<5x16xf32>
    %cst_43 = arith.constant 1.000000e+00 : f32
    %219 = vector.broadcast %cst_43 : f32 to vector<5x16xf32>
    %220 = arith.addf %219, %218 : vector<5x16xf32>
    %221 = arith.divf %219, %220 : vector<5x16xf32>
    %222 = arith.mulf %213, %199 : vector<5x16xf32>
    %223 = arith.mulf %207, %215 : vector<5x16xf32>
    %224 = arith.addf %222, %223 : vector<5x16xf32>
    %225 = math.tanh %224 : vector<5x16xf32>
    %226 = arith.mulf %221, %225 : vector<5x16xf32>
    %227 = arith.addf %188, %193 : vector<5x64xf32>
    %228 = vector.extract_strided_slice %227 {offsets = [0, 0], sizes = [5, 16], strides = [1, 1]} : vector<5x64xf32> to vector<5x16xf32>
    %229 = arith.negf %228 : vector<5x16xf32>
    %230 = math.exp %229 : vector<5x16xf32>
    %cst_44 = arith.constant 1.000000e+00 : f32
    %231 = vector.broadcast %cst_44 : f32 to vector<5x16xf32>
    %232 = arith.addf %231, %230 : vector<5x16xf32>
    %233 = arith.divf %231, %232 : vector<5x16xf32>
    %234 = vector.extract_strided_slice %227 {offsets = [0, 16], sizes = [5, 16], strides = [1, 1]} : vector<5x64xf32> to vector<5x16xf32>
    %235 = arith.negf %234 : vector<5x16xf32>
    %236 = math.exp %235 : vector<5x16xf32>
    %cst_45 = arith.constant 1.000000e+00 : f32
    %237 = vector.broadcast %cst_45 : f32 to vector<5x16xf32>
    %238 = arith.addf %237, %236 : vector<5x16xf32>
    %239 = arith.divf %237, %238 : vector<5x16xf32>
    %240 = vector.extract_strided_slice %227 {offsets = [0, 32], sizes = [5, 16], strides = [1, 1]} : vector<5x64xf32> to vector<5x16xf32>
    %241 = math.tanh %240 : vector<5x16xf32>
    %242 = vector.extract_strided_slice %227 {offsets = [0, 48], sizes = [5, 16], strides = [1, 1]} : vector<5x64xf32> to vector<5x16xf32>
    %243 = arith.negf %242 : vector<5x16xf32>
    %244 = math.exp %243 : vector<5x16xf32>
    %cst_46 = arith.constant 1.000000e+00 : f32
    %245 = vector.broadcast %cst_46 : f32 to vector<5x16xf32>
    %246 = arith.addf %245, %244 : vector<5x16xf32>
    %247 = arith.divf %245, %246 : vector<5x16xf32>
    %248 = arith.mulf %239, %200 : vector<5x16xf32>
    %249 = arith.mulf %233, %241 : vector<5x16xf32>
    %250 = arith.addf %248, %249 : vector<5x16xf32>
    %251 = math.tanh %250 : vector<5x16xf32>
    %252 = arith.mulf %247, %251 : vector<5x16xf32>
    %253 = vector.shape_cast %196 : vector<5x1xi1> to vector<5x1xi1>
    %254 = vector.broadcast %253 : vector<5x1xi1> to vector<5x16xi1>
    %255 = arith.select %254, %226, %194 : vector<5x16xi1>, vector<5x16xf32>
    %256 = vector.shape_cast %196 : vector<5x1xi1> to vector<5x1xi1>
    %257 = vector.broadcast %256 : vector<5x1xi1> to vector<5x16xi1>
    %258 = arith.select %257, %224, %199 : vector<5x16xi1>, vector<5x16xf32>
    %cst_47 = arith.constant 0.000000e+00 : f32
    %259 = vector.shape_cast %198 : vector<5x1xi1> to vector<5x1xi1>
    %260 = vector.broadcast %259 : vector<5x1xi1> to vector<5x16xi1>
    %261 = vector.broadcast %cst_47 : f32 to vector<5x16xf32>
    %262 = arith.select %260, %252, %261 : vector<5x16xi1>, vector<5x16xf32>
    %cst_48 = arith.constant 0.000000e+00 : f32
    %263 = vector.shape_cast %198 : vector<5x1xi1> to vector<5x1xi1>
    %264 = vector.broadcast %263 : vector<5x1xi1> to vector<5x16xi1>
    %265 = vector.broadcast %cst_48 : f32 to vector<5x16xf32>
    %266 = arith.select %264, %250, %265 : vector<5x16xi1>, vector<5x16xf32>
    %267 = tpu.concatenate %255, %262 in 1 : vector<5x16xf32>, vector<5x16xf32> -> vector<5x32xf32>
    %268 = tpu.concatenate %258, %266 in 1 : vector<5x16xf32>, vector<5x16xf32> -> vector<5x32xf32>
    %cst_49 = arith.constant 0.000000e+00 : f32
    %269 = vector.shape_cast %196 : vector<5x1xi1> to vector<5x1xi1>
    %270 = vector.broadcast %269 : vector<5x1xi1> to vector<5x16xi1>
    %271 = vector.broadcast %cst_49 : f32 to vector<5x16xf32>
    %272 = arith.select %270, %255, %271 : vector<5x16xi1>, vector<5x16xf32>
    %c10_50 = arith.constant 10 : index
    %c0_51 = arith.constant 0 : index
    %273 = vector.load %arg11[%c10_50, %c0_51] : memref<20x16xf32, #tpu.memory_space<vmem>>, vector<5x16xf32>
    tpu.vector_store %arg11[%c10_50, %c0_51], %272 {strides = array<i32>} : memref<20x16xf32, #tpu.memory_space<vmem>>, vector<5x16xf32>,
    %c5_52 = arith.constant 5 : index
    %c0_53 = arith.constant 0 : index
    %274 = vector.load %arg12[%c5_52, %c0_53] : memref<20x16xf32, #tpu.memory_space<vmem>>, vector<5x16xf32>
    tpu.vector_store %arg12[%c5_52, %c0_53], %262 {strides = array<i32>} : memref<20x16xf32, #tpu.memory_space<vmem>>, vector<5x16xf32>,
    %275 = vector.extract_strided_slice %8 {offsets = [15, 0], sizes = [5, 64], strides = [1, 1]} : vector<20x128xf32> to vector<5x64xf32>
    %276 = vector.extract_strided_slice %8 {offsets = [0, 64], sizes = [5, 64], strides = [1, 1]} : vector<20x128xf32> to vector<5x64xf32>
    %cst_54 = arith.constant dense<0.000000e+00> : vector<5x128xf32>
    %277 = tpu.matmul %267, %3, %cst_54 {dimension_numbers = #tpu.dot_dimension_numbers<[1], [0], [0], [1], [0, 0, 1, 1], [], []>} : vector<5x32xf32>, vector<32x128xf32>, vector<5x128xf32> -> vector<5x128xf32>
    %278 = vector.broadcast %4 : vector<1x128xf32> to vector<5x128xf32>
    %279 = arith.addf %277, %278 : vector<5x128xf32>
    %280 = vector.extract_strided_slice %279 {offsets = [0, 0], sizes = [5, 64], strides = [1, 1]} : vector<5x128xf32> to vector<5x64xf32>
    %281 = vector.extract_strided_slice %279 {offsets = [0, 64], sizes = [5, 64], strides = [1, 1]} : vector<5x128xf32> to vector<5x64xf32>
    %282 = vector.extract_strided_slice %267 {offsets = [0, 0], sizes = [5, 16], strides = [1, 1]} : vector<5x32xf32> to vector<5x16xf32>
    %c3_i32_55 = arith.constant 3 : i32
    %283 = vector.broadcast %c3_i32_55 : i32 to vector<5x1xi32>
    %284 = arith.cmpi sgt, %0, %283 : vector<5x1xi32>
    %c0_i32_56 = arith.constant 0 : i32
    %285 = vector.broadcast %c0_i32_56 : i32 to vector<5x1xi32>
    %286 = arith.cmpi sgt, %0, %285 : vector<5x1xi32>
    %287 = vector.extract_strided_slice %268 {offsets = [0, 0], sizes = [5, 16], strides = [1, 1]} : vector<5x32xf32> to vector<5x16xf32>
    %288 = vector.extract_strided_slice %268 {offsets = [0, 16], sizes = [5, 16], strides = [1, 1]} : vector<5x32xf32> to vector<5x16xf32>
    %289 = arith.addf %275, %280 : vector<5x64xf32>
    %290 = vector.extract_strided_slice %289 {offsets = [0, 0], sizes = [5, 16], strides = [1, 1]} : vector<5x64xf32> to vector<5x16xf32>
    %291 = arith.negf %290 : vector<5x16xf32>
    %292 = math.exp %291 : vector<5x16xf32>
    %cst_57 = arith.constant 1.000000e+00 : f32
    %293 = vector.broadcast %cst_57 : f32 to vector<5x16xf32>
    %294 = arith.addf %293, %292 : vector<5x16xf32>
    %295 = arith.divf %293, %294 : vector<5x16xf32>
    %296 = vector.extract_strided_slice %289 {offsets = [0, 16], sizes = [5, 16], strides = [1, 1]} : vector<5x64xf32> to vector<5x16xf32>
    %297 = arith.negf %296 : vector<5x16xf32>
    %298 = math.exp %297 : vector<5x16xf32>
    %cst_58 = arith.constant 1.000000e+00 : f32
    %299 = vector.broadcast %cst_58 : f32 to vector<5x16xf32>
    %300 = arith.addf %299, %298 : vector<5x16xf32>
    %301 = arith.divf %299, %300 : vector<5x16xf32>
    %302 = vector.extract_strided_slice %289 {offsets = [0, 32], sizes = [5, 16], strides = [1, 1]} : vector<5x64xf32> to vector<5x16xf32>
    %303 = math.tanh %302 : vector<5x16xf32>
    %304 = vector.extract_strided_slice %289 {offsets = [0, 48], sizes = [5, 16], strides = [1, 1]} : vector<5x64xf32> to vector<5x16xf32>
    %305 = arith.negf %304 : vector<5x16xf32>
    %306 = math.exp %305 : vector<5x16xf32>
    %cst_59 = arith.constant 1.000000e+00 : f32
    %307 = vector.broadcast %cst_59 : f32 to vector<5x16xf32>
    %308 = arith.addf %307, %306 : vector<5x16xf32>
    %309 = arith.divf %307, %308 : vector<5x16xf32>
    %310 = arith.mulf %301, %287 : vector<5x16xf32>
    %311 = arith.mulf %295, %303 : vector<5x16xf32>
    %312 = arith.addf %310, %311 : vector<5x16xf32>
    %313 = math.tanh %312 : vector<5x16xf32>
    %314 = arith.mulf %309, %313 : vector<5x16xf32>
    %315 = arith.addf %276, %281 : vector<5x64xf32>
    %316 = vector.extract_strided_slice %315 {offsets = [0, 0], sizes = [5, 16], strides = [1, 1]} : vector<5x64xf32> to vector<5x16xf32>
    %317 = arith.negf %316 : vector<5x16xf32>
    %318 = math.exp %317 : vector<5x16xf32>
    %cst_60 = arith.constant 1.000000e+00 : f32
    %319 = vector.broadcast %cst_60 : f32 to vector<5x16xf32>
    %320 = arith.addf %319, %318 : vector<5x16xf32>
    %321 = arith.divf %319, %320 : vector<5x16xf32>
    %322 = vector.extract_strided_slice %315 {offsets = [0, 16], sizes = [5, 16], strides = [1, 1]} : vector<5x64xf32> to vector<5x16xf32>
    %323 = arith.negf %322 : vector<5x16xf32>
    %324 = math.exp %323 : vector<5x16xf32>
    %cst_61 = arith.constant 1.000000e+00 : f32
    %325 = vector.broadcast %cst_61 : f32 to vector<5x16xf32>
    %326 = arith.addf %325, %324 : vector<5x16xf32>
    %327 = arith.divf %325, %326 : vector<5x16xf32>
    %328 = vector.extract_strided_slice %315 {offsets = [0, 32], sizes = [5, 16], strides = [1, 1]} : vector<5x64xf32> to vector<5x16xf32>
    %329 = math.tanh %328 : vector<5x16xf32>
    %330 = vector.extract_strided_slice %315 {offsets = [0, 48], sizes = [5, 16], strides = [1, 1]} : vector<5x64xf32> to vector<5x16xf32>
    %331 = arith.negf %330 : vector<5x16xf32>
    %332 = math.exp %331 : vector<5x16xf32>
    %cst_62 = arith.constant 1.000000e+00 : f32
    %333 = vector.broadcast %cst_62 : f32 to vector<5x16xf32>
    %334 = arith.addf %333, %332 : vector<5x16xf32>
    %335 = arith.divf %333, %334 : vector<5x16xf32>
    %336 = arith.mulf %327, %288 : vector<5x16xf32>
    %337 = arith.mulf %321, %329 : vector<5x16xf32>
    %338 = arith.addf %336, %337 : vector<5x16xf32>
    %339 = math.tanh %338 : vector<5x16xf32>
    %340 = arith.mulf %335, %339 : vector<5x16xf32>
    %341 = vector.shape_cast %284 : vector<5x1xi1> to vector<5x1xi1>
    %342 = vector.broadcast %341 : vector<5x1xi1> to vector<5x16xi1>
    %343 = arith.select %342, %314, %282 : vector<5x16xi1>, vector<5x16xf32>
    %cst_63 = arith.constant 0.000000e+00 : f32
    %344 = vector.shape_cast %286 : vector<5x1xi1> to vector<5x1xi1>
    %345 = vector.broadcast %344 : vector<5x1xi1> to vector<5x16xi1>
    %346 = vector.broadcast %cst_63 : f32 to vector<5x16xf32>
    %347 = arith.select %345, %340, %346 : vector<5x16xi1>, vector<5x16xf32>
    %cst_64 = arith.constant 0.000000e+00 : f32
    %348 = vector.shape_cast %284 : vector<5x1xi1> to vector<5x1xi1>
    %349 = vector.broadcast %348 : vector<5x1xi1> to vector<5x16xi1>
    %350 = vector.broadcast %cst_64 : f32 to vector<5x16xf32>
    %351 = arith.select %349, %343, %350 : vector<5x16xi1>, vector<5x16xf32>
    %c15_65 = arith.constant 15 : index
    %c0_66 = arith.constant 0 : index
    %352 = vector.load %arg11[%c15_65, %c0_66] : memref<20x16xf32, #tpu.memory_space<vmem>>, vector<5x16xf32>
    tpu.vector_store %arg11[%c15_65, %c0_66], %351 {strides = array<i32>} : memref<20x16xf32, #tpu.memory_space<vmem>>, vector<5x16xf32>,
    %c0_67 = arith.constant 0 : index
    %c0_68 = arith.constant 0 : index
    %353 = vector.load %arg12[%c0_67, %c0_68] : memref<20x16xf32, #tpu.memory_space<vmem>>, vector<5x16xf32>
    tpu.vector_store %arg12[%c0_67, %c0_68], %347 {strides = array<i32>} : memref<20x16xf32, #tpu.memory_space<vmem>>, vector<5x16xf32>,
    %c0_69 = arith.constant 0 : index
    %c0_70 = arith.constant 0 : index
    %354 = vector.load %arg6[%c0_69, %c0_70] : memref<32x128xf32, #tpu.memory_space<vmem>>, vector<32x128xf32>
    %c0_71 = arith.constant 0 : index
    %c0_72 = arith.constant 0 : index
    %355 = vector.load %arg7[%c0_71, %c0_72] : memref<1x128xf32, #tpu.memory_space<vmem>>, vector<1x128xf32>
    %c0_73 = arith.constant 0 : index
    %c0_74 = arith.constant 0 : index
    %356 = vector.load %arg8[%c0_73, %c0_74] : memref<32x128xf32, #tpu.memory_space<vmem>>, vector<32x128xf32>
    %c0_75 = arith.constant 0 : index
    %c0_76 = arith.constant 0 : index
    %357 = vector.load %arg9[%c0_75, %c0_76] : memref<1x128xf32, #tpu.memory_space<vmem>>, vector<1x128xf32>
    %c0_77 = arith.constant 0 : index
    %c0_78 = arith.constant 0 : index
    %358 = vector.load %arg11[%c0_77, %c0_78] : memref<20x16xf32, #tpu.memory_space<vmem>>, vector<20x16xf32>
    %c0_79 = arith.constant 0 : index
    %c0_80 = arith.constant 0 : index
    %359 = vector.load %arg12[%c0_79, %c0_80] : memref<20x16xf32, #tpu.memory_space<vmem>>, vector<20x16xf32>
    %360 = tpu.concatenate %358, %359 in 1 : vector<20x16xf32>, vector<20x16xf32> -> vector<20x32xf32>
    %cst_81 = arith.constant dense<0.000000e+00> : vector<20x128xf32>
    %361 = tpu.matmul %360, %354, %cst_81 {dimension_numbers = #tpu.dot_dimension_numbers<[1], [0], [0], [1], [0, 0, 1, 1], [], []>} : vector<20x32xf32>, vector<32x128xf32>, vector<20x128xf32> -> vector<20x128xf32>
    %362 = vector.broadcast %355 : vector<1x128xf32> to vector<20x128xf32>
    %363 = arith.addf %361, %362 : vector<20x128xf32>
    %cst_82 = arith.constant 0.000000e+00 : f32
    %364 = vector.broadcast %cst_82 : f32 to vector<5x32xf32>
    %cst_83 = arith.constant 0.000000e+00 : f32
    %365 = vector.broadcast %cst_83 : f32 to vector<5x32xf32>
    %cst_84 = arith.constant 0.000000e+00 : f32
    %366 = vector.broadcast %cst_84 : f32 to vector<5x16xf32>
    %cst_85 = arith.constant 0.000000e+00 : f32
    %367 = vector.broadcast %cst_85 : f32 to vector<5x16xf32>
    %368 = vector.extract_strided_slice %363 {offsets = [0, 0], sizes = [5, 64], strides = [1, 1]} : vector<20x128xf32> to vector<5x64xf32>
    %369 = vector.extract_strided_slice %363 {offsets = [15, 64], sizes = [5, 64], strides = [1, 1]} : vector<20x128xf32> to vector<5x64xf32>
    %cst_86 = arith.constant dense<0.000000e+00> : vector<5x128xf32>
    %370 = tpu.matmul %364, %356, %cst_86 {dimension_numbers = #tpu.dot_dimension_numbers<[1], [0], [0], [1], [0, 0, 1, 1], [], []>} : vector<5x32xf32>, vector<32x128xf32>, vector<5x128xf32> -> vector<5x128xf32>
    %371 = vector.broadcast %357 : vector<1x128xf32> to vector<5x128xf32>
    %372 = arith.addf %370, %371 : vector<5x128xf32>
    %373 = vector.extract_strided_slice %372 {offsets = [0, 0], sizes = [5, 64], strides = [1, 1]} : vector<5x128xf32> to vector<5x64xf32>
    %374 = vector.extract_strided_slice %372 {offsets = [0, 64], sizes = [5, 64], strides = [1, 1]} : vector<5x128xf32> to vector<5x64xf32>
    %375 = vector.extract_strided_slice %364 {offsets = [0, 0], sizes = [5, 16], strides = [1, 1]} : vector<5x32xf32> to vector<5x16xf32>
    %c0_i32_87 = arith.constant 0 : i32
    %376 = vector.broadcast %c0_i32_87 : i32 to vector<5x1xi32>
    %377 = arith.cmpi sgt, %0, %376 : vector<5x1xi32>
    %c3_i32_88 = arith.constant 3 : i32
    %378 = vector.broadcast %c3_i32_88 : i32 to vector<5x1xi32>
    %379 = arith.cmpi sgt, %0, %378 : vector<5x1xi32>
    %380 = vector.extract_strided_slice %365 {offsets = [0, 0], sizes = [5, 16], strides = [1, 1]} : vector<5x32xf32> to vector<5x16xf32>
    %381 = vector.extract_strided_slice %365 {offsets = [0, 16], sizes = [5, 16], strides = [1, 1]} : vector<5x32xf32> to vector<5x16xf32>
    %382 = arith.addf %368, %373 : vector<5x64xf32>
    %383 = vector.extract_strided_slice %382 {offsets = [0, 0], sizes = [5, 16], strides = [1, 1]} : vector<5x64xf32> to vector<5x16xf32>
    %384 = arith.negf %383 : vector<5x16xf32>
    %385 = math.exp %384 : vector<5x16xf32>
    %cst_89 = arith.constant 1.000000e+00 : f32
    %386 = vector.broadcast %cst_89 : f32 to vector<5x16xf32>
    %387 = arith.addf %386, %385 : vector<5x16xf32>
    %388 = arith.divf %386, %387 : vector<5x16xf32>
    %389 = vector.extract_strided_slice %382 {offsets = [0, 16], sizes = [5, 16], strides = [1, 1]} : vector<5x64xf32> to vector<5x16xf32>
    %390 = arith.negf %389 : vector<5x16xf32>
    %391 = math.exp %390 : vector<5x16xf32>
    %cst_90 = arith.constant 1.000000e+00 : f32
    %392 = vector.broadcast %cst_90 : f32 to vector<5x16xf32>
    %393 = arith.addf %392, %391 : vector<5x16xf32>
    %394 = arith.divf %392, %393 : vector<5x16xf32>
    %395 = vector.extract_strided_slice %382 {offsets = [0, 32], sizes = [5, 16], strides = [1, 1]} : vector<5x64xf32> to vector<5x16xf32>
    %396 = math.tanh %395 : vector<5x16xf32>
    %397 = vector.extract_strided_slice %382 {offsets = [0, 48], sizes = [5, 16], strides = [1, 1]} : vector<5x64xf32> to vector<5x16xf32>
    %398 = arith.negf %397 : vector<5x16xf32>
    %399 = math.exp %398 : vector<5x16xf32>
    %cst_91 = arith.constant 1.000000e+00 : f32
    %400 = vector.broadcast %cst_91 : f32 to vector<5x16xf32>
    %401 = arith.addf %400, %399 : vector<5x16xf32>
    %402 = arith.divf %400, %401 : vector<5x16xf32>
    %403 = arith.mulf %394, %380 : vector<5x16xf32>
    %404 = arith.mulf %388, %396 : vector<5x16xf32>
    %405 = arith.addf %403, %404 : vector<5x16xf32>
    %406 = math.tanh %405 : vector<5x16xf32>
    %407 = arith.mulf %402, %406 : vector<5x16xf32>
    %408 = arith.addf %369, %374 : vector<5x64xf32>
    %409 = vector.extract_strided_slice %408 {offsets = [0, 0], sizes = [5, 16], strides = [1, 1]} : vector<5x64xf32> to vector<5x16xf32>
    %410 = arith.negf %409 : vector<5x16xf32>
    %411 = math.exp %410 : vector<5x16xf32>
    %cst_92 = arith.constant 1.000000e+00 : f32
    %412 = vector.broadcast %cst_92 : f32 to vector<5x16xf32>
    %413 = arith.addf %412, %411 : vector<5x16xf32>
    %414 = arith.divf %412, %413 : vector<5x16xf32>
    %415 = vector.extract_strided_slice %408 {offsets = [0, 16], sizes = [5, 16], strides = [1, 1]} : vector<5x64xf32> to vector<5x16xf32>
    %416 = arith.negf %415 : vector<5x16xf32>
    %417 = math.exp %416 : vector<5x16xf32>
    %cst_93 = arith.constant 1.000000e+00 : f32
    %418 = vector.broadcast %cst_93 : f32 to vector<5x16xf32>
    %419 = arith.addf %418, %417 : vector<5x16xf32>
    %420 = arith.divf %418, %419 : vector<5x16xf32>
    %421 = vector.extract_strided_slice %408 {offsets = [0, 32], sizes = [5, 16], strides = [1, 1]} : vector<5x64xf32> to vector<5x16xf32>
    %422 = math.tanh %421 : vector<5x16xf32>
    %423 = vector.extract_strided_slice %408 {offsets = [0, 48], sizes = [5, 16], strides = [1, 1]} : vector<5x64xf32> to vector<5x16xf32>
    %424 = arith.negf %423 : vector<5x16xf32>
    %425 = math.exp %424 : vector<5x16xf32>
    %cst_94 = arith.constant 1.000000e+00 : f32
    %426 = vector.broadcast %cst_94 : f32 to vector<5x16xf32>
    %427 = arith.addf %426, %425 : vector<5x16xf32>
    %428 = arith.divf %426, %427 : vector<5x16xf32>
    %429 = arith.mulf %420, %381 : vector<5x16xf32>
    %430 = arith.mulf %414, %422 : vector<5x16xf32>
    %431 = arith.addf %429, %430 : vector<5x16xf32>
    %432 = math.tanh %431 : vector<5x16xf32>
    %433 = arith.mulf %428, %432 : vector<5x16xf32>
    %434 = vector.shape_cast %377 : vector<5x1xi1> to vector<5x1xi1>
    %435 = vector.broadcast %434 : vector<5x1xi1> to vector<5x16xi1>
    %436 = arith.select %435, %407, %375 : vector<5x16xi1>, vector<5x16xf32>
    %437 = vector.shape_cast %377 : vector<5x1xi1> to vector<5x1xi1>
    %438 = vector.broadcast %437 : vector<5x1xi1> to vector<5x16xi1>
    %439 = arith.select %438, %405, %380 : vector<5x16xi1>, vector<5x16xf32>
    %cst_95 = arith.constant 0.000000e+00 : f32
    %440 = vector.shape_cast %379 : vector<5x1xi1> to vector<5x1xi1>
    %441 = vector.broadcast %440 : vector<5x1xi1> to vector<5x16xi1>
    %442 = vector.broadcast %cst_95 : f32 to vector<5x16xf32>
    %443 = arith.select %441, %433, %442 : vector<5x16xi1>, vector<5x16xf32>
    %cst_96 = arith.constant 0.000000e+00 : f32
    %444 = vector.shape_cast %379 : vector<5x1xi1> to vector<5x1xi1>
    %445 = vector.broadcast %444 : vector<5x1xi1> to vector<5x16xi1>
    %446 = vector.broadcast %cst_96 : f32 to vector<5x16xf32>
    %447 = arith.select %445, %431, %446 : vector<5x16xi1>, vector<5x16xf32>
    %448 = tpu.concatenate %436, %443 in 1 : vector<5x16xf32>, vector<5x16xf32> -> vector<5x32xf32>
    %449 = tpu.concatenate %439, %447 in 1 : vector<5x16xf32>, vector<5x16xf32> -> vector<5x32xf32>
    %c1_i32_97 = arith.constant 1 : i32
    %450 = vector.broadcast %c1_i32_97 : i32 to vector<5x1xi32>
    %451 = arith.subi %0, %450 : vector<5x1xi32>
    %c0_i32_98 = arith.constant 0 : i32
    %452 = vector.broadcast %c0_i32_98 : i32 to vector<5x1xi32>
    %453 = arith.cmpi eq, %451, %452 : vector<5x1xi32>
    %454 = vector.shape_cast %453 : vector<5x1xi1> to vector<5x1xi1>
    %455 = vector.broadcast %454 : vector<5x1xi1> to vector<5x16xi1>
    %456 = arith.select %455, %436, %366 : vector<5x16xi1>, vector<5x16xf32>
    %c1_i32_99 = arith.constant 1 : i32
    %457 = vector.broadcast %c1_i32_99 : i32 to vector<5x1xi32>
    %458 = arith.subi %0, %457 : vector<5x1xi32>
    %c3_i32_100 = arith.constant 3 : i32
    %459 = vector.broadcast %c3_i32_100 : i32 to vector<5x1xi32>
    %460 = arith.cmpi eq, %458, %459 : vector<5x1xi32>
    %461 = vector.shape_cast %460 : vector<5x1xi1> to vector<5x1xi1>
    %462 = vector.broadcast %461 : vector<5x1xi1> to vector<5x16xi1>
    %463 = arith.select %462, %443, %367 : vector<5x16xi1>, vector<5x16xf32>
    %464 = vector.extract_strided_slice %363 {offsets = [5, 0], sizes = [5, 64], strides = [1, 1]} : vector<20x128xf32> to vector<5x64xf32>
    %465 = vector.extract_strided_slice %363 {offsets = [10, 64], sizes = [5, 64], strides = [1, 1]} : vector<20x128xf32> to vector<5x64xf32>
    %cst_101 = arith.constant dense<0.000000e+00> : vector<5x128xf32>
    %466 = tpu.matmul %448, %356, %cst_101 {dimension_numbers = #tpu.dot_dimension_numbers<[1], [0], [0], [1], [0, 0, 1, 1], [], []>} : vector<5x32xf32>, vector<32x128xf32>, vector<5x128xf32> -> vector<5x128xf32>
    %467 = vector.broadcast %357 : vector<1x128xf32> to vector<5x128xf32>
    %468 = arith.addf %466, %467 : vector<5x128xf32>
    %469 = vector.extract_strided_slice %468 {offsets = [0, 0], sizes = [5, 64], strides = [1, 1]} : vector<5x128xf32> to vector<5x64xf32>
    %470 = vector.extract_strided_slice %468 {offsets = [0, 64], sizes = [5, 64], strides = [1, 1]} : vector<5x128xf32> to vector<5x64xf32>
    %471 = vector.extract_strided_slice %448 {offsets = [0, 0], sizes = [5, 16], strides = [1, 1]} : vector<5x32xf32> to vector<5x16xf32>
    %c1_i32_102 = arith.constant 1 : i32
    %472 = vector.broadcast %c1_i32_102 : i32 to vector<5x1xi32>
    %473 = arith.cmpi sgt, %0, %472 : vector<5x1xi32>
    %c2_i32_103 = arith.constant 2 : i32
    %474 = vector.broadcast %c2_i32_103 : i32 to vector<5x1xi32>
    %475 = arith.cmpi sgt, %0, %474 : vector<5x1xi32>
    %476 = vector.extract_strided_slice %449 {offsets = [0, 0], sizes = [5, 16], strides = [1, 1]} : vector<5x32xf32> to vector<5x16xf32>
    %477 = vector.extract_strided_slice %449 {offsets = [0, 16], sizes = [5, 16], strides = [1, 1]} : vector<5x32xf32> to vector<5x16xf32>
    %478 = arith.addf %464, %469 : vector<5x64xf32>
    %479 = vector.extract_strided_slice %478 {offsets = [0, 0], sizes = [5, 16], strides = [1, 1]} : vector<5x64xf32> to vector<5x16xf32>
    %480 = arith.negf %479 : vector<5x16xf32>
    %481 = math.exp %480 : vector<5x16xf32>
    %cst_104 = arith.constant 1.000000e+00 : f32
    %482 = vector.broadcast %cst_104 : f32 to vector<5x16xf32>
    %483 = arith.addf %482, %481 : vector<5x16xf32>
    %484 = arith.divf %482, %483 : vector<5x16xf32>
    %485 = vector.extract_strided_slice %478 {offsets = [0, 16], sizes = [5, 16], strides = [1, 1]} : vector<5x64xf32> to vector<5x16xf32>
    %486 = arith.negf %485 : vector<5x16xf32>
    %487 = math.exp %486 : vector<5x16xf32>
    %cst_105 = arith.constant 1.000000e+00 : f32
    %488 = vector.broadcast %cst_105 : f32 to vector<5x16xf32>
    %489 = arith.addf %488, %487 : vector<5x16xf32>
    %490 = arith.divf %488, %489 : vector<5x16xf32>
    %491 = vector.extract_strided_slice %478 {offsets = [0, 32], sizes = [5, 16], strides = [1, 1]} : vector<5x64xf32> to vector<5x16xf32>
    %492 = math.tanh %491 : vector<5x16xf32>
    %493 = vector.extract_strided_slice %478 {offsets = [0, 48], sizes = [5, 16], strides = [1, 1]} : vector<5x64xf32> to vector<5x16xf32>
    %494 = arith.negf %493 : vector<5x16xf32>
    %495 = math.exp %494 : vector<5x16xf32>
    %cst_106 = arith.constant 1.000000e+00 : f32
    %496 = vector.broadcast %cst_106 : f32 to vector<5x16xf32>
    %497 = arith.addf %496, %495 : vector<5x16xf32>
    %498 = arith.divf %496, %497 : vector<5x16xf32>
    %499 = arith.mulf %490, %476 : vector<5x16xf32>
    %500 = arith.mulf %484, %492 : vector<5x16xf32>
    %501 = arith.addf %499, %500 : vector<5x16xf32>
    %502 = math.tanh %501 : vector<5x16xf32>
    %503 = arith.mulf %498, %502 : vector<5x16xf32>
    %504 = arith.addf %465, %470 : vector<5x64xf32>
    %505 = vector.extract_strided_slice %504 {offsets = [0, 0], sizes = [5, 16], strides = [1, 1]} : vector<5x64xf32> to vector<5x16xf32>
    %506 = arith.negf %505 : vector<5x16xf32>
    %507 = math.exp %506 : vector<5x16xf32>
    %cst_107 = arith.constant 1.000000e+00 : f32
    %508 = vector.broadcast %cst_107 : f32 to vector<5x16xf32>
    %509 = arith.addf %508, %507 : vector<5x16xf32>
    %510 = arith.divf %508, %509 : vector<5x16xf32>
    %511 = vector.extract_strided_slice %504 {offsets = [0, 16], sizes = [5, 16], strides = [1, 1]} : vector<5x64xf32> to vector<5x16xf32>
    %512 = arith.negf %511 : vector<5x16xf32>
    %513 = math.exp %512 : vector<5x16xf32>
    %cst_108 = arith.constant 1.000000e+00 : f32
    %514 = vector.broadcast %cst_108 : f32 to vector<5x16xf32>
    %515 = arith.addf %514, %513 : vector<5x16xf32>
    %516 = arith.divf %514, %515 : vector<5x16xf32>
    %517 = vector.extract_strided_slice %504 {offsets = [0, 32], sizes = [5, 16], strides = [1, 1]} : vector<5x64xf32> to vector<5x16xf32>
    %518 = math.tanh %517 : vector<5x16xf32>
    %519 = vector.extract_strided_slice %504 {offsets = [0, 48], sizes = [5, 16], strides = [1, 1]} : vector<5x64xf32> to vector<5x16xf32>
    %520 = arith.negf %519 : vector<5x16xf32>
    %521 = math.exp %520 : vector<5x16xf32>
    %cst_109 = arith.constant 1.000000e+00 : f32
    %522 = vector.broadcast %cst_109 : f32 to vector<5x16xf32>
    %523 = arith.addf %522, %521 : vector<5x16xf32>
    %524 = arith.divf %522, %523 : vector<5x16xf32>
    %525 = arith.mulf %516, %477 : vector<5x16xf32>
    %526 = arith.mulf %510, %518 : vector<5x16xf32>
    %527 = arith.addf %525, %526 : vector<5x16xf32>
    %528 = math.tanh %527 : vector<5x16xf32>
    %529 = arith.mulf %524, %528 : vector<5x16xf32>
    %530 = vector.shape_cast %473 : vector<5x1xi1> to vector<5x1xi1>
    %531 = vector.broadcast %530 : vector<5x1xi1> to vector<5x16xi1>
    %532 = arith.select %531, %503, %471 : vector<5x16xi1>, vector<5x16xf32>
    %533 = vector.shape_cast %473 : vector<5x1xi1> to vector<5x1xi1>
    %534 = vector.broadcast %533 : vector<5x1xi1> to vector<5x16xi1>
    %535 = arith.select %534, %501, %476 : vector<5x16xi1>, vector<5x16xf32>
    %cst_110 = arith.constant 0.000000e+00 : f32
    %536 = vector.shape_cast %475 : vector<5x1xi1> to vector<5x1xi1>
    %537 = vector.broadcast %536 : vector<5x1xi1> to vector<5x16xi1>
    %538 = vector.broadcast %cst_110 : f32 to vector<5x16xf32>
    %539 = arith.select %537, %529, %538 : vector<5x16xi1>, vector<5x16xf32>
    %cst_111 = arith.constant 0.000000e+00 : f32
    %540 = vector.shape_cast %475 : vector<5x1xi1> to vector<5x1xi1>
    %541 = vector.broadcast %540 : vector<5x1xi1> to vector<5x16xi1>
    %542 = vector.broadcast %cst_111 : f32 to vector<5x16xf32>
    %543 = arith.select %541, %527, %542 : vector<5x16xi1>, vector<5x16xf32>
    %544 = tpu.concatenate %532, %539 in 1 : vector<5x16xf32>, vector<5x16xf32> -> vector<5x32xf32>
    %545 = tpu.concatenate %535, %543 in 1 : vector<5x16xf32>, vector<5x16xf32> -> vector<5x32xf32>
    %c1_i32_112 = arith.constant 1 : i32
    %546 = vector.broadcast %c1_i32_112 : i32 to vector<5x1xi32>
    %547 = arith.subi %0, %546 : vector<5x1xi32>
    %c1_i32_113 = arith.constant 1 : i32
    %548 = vector.broadcast %c1_i32_113 : i32 to vector<5x1xi32>
    %549 = arith.cmpi eq, %547, %548 : vector<5x1xi32>
    %550 = vector.shape_cast %549 : vector<5x1xi1> to vector<5x1xi1>
    %551 = vector.broadcast %550 : vector<5x1xi1> to vector<5x16xi1>
    %552 = arith.select %551, %532, %456 : vector<5x16xi1>, vector<5x16xf32>
    %c1_i32_114 = arith.constant 1 : i32
    %553 = vector.broadcast %c1_i32_114 : i32 to vector<5x1xi32>
    %554 = arith.subi %0, %553 : vector<5x1xi32>
    %c2_i32_115 = arith.constant 2 : i32
    %555 = vector.broadcast %c2_i32_115 : i32 to vector<5x1xi32>
    %556 = arith.cmpi eq, %554, %555 : vector<5x1xi32>
    %557 = vector.shape_cast %556 : vector<5x1xi1> to vector<5x1xi1>
    %558 = vector.broadcast %557 : vector<5x1xi1> to vector<5x16xi1>
    %559 = arith.select %558, %539, %463 : vector<5x16xi1>, vector<5x16xf32>
    %560 = vector.extract_strided_slice %363 {offsets = [10, 0], sizes = [5, 64], strides = [1, 1]} : vector<20x128xf32> to vector<5x64xf32>
    %561 = vector.extract_strided_slice %363 {offsets = [5, 64], sizes = [5, 64], strides = [1, 1]} : vector<20x128xf32> to vector<5x64xf32>
    %cst_116 = arith.constant dense<0.000000e+00> : vector<5x128xf32>
    %562 = tpu.matmul %544, %356, %cst_116 {dimension_numbers = #tpu.dot_dimension_numbers<[1], [0], [0], [1], [0, 0, 1, 1], [], []>} : vector<5x32xf32>, vector<32x128xf32>, vector<5x128xf32> -> vector<5x128xf32>
    %563 = vector.broadcast %357 : vector<1x128xf32> to vector<5x128xf32>
    %564 = arith.addf %562, %563 : vector<5x128xf32>
    %565 = vector.extract_strided_slice %564 {offsets = [0, 0], sizes = [5, 64], strides = [1, 1]} : vector<5x128xf32> to vector<5x64xf32>
    %566 = vector.extract_strided_slice %564 {offsets = [0, 64], sizes = [5, 64], strides = [1, 1]} : vector<5x128xf32> to vector<5x64xf32>
    %567 = vector.extract_strided_slice %544 {offsets = [0, 0], sizes = [5, 16], strides = [1, 1]} : vector<5x32xf32> to vector<5x16xf32>
    %c2_i32_117 = arith.constant 2 : i32
    %568 = vector.broadcast %c2_i32_117 : i32 to vector<5x1xi32>
    %569 = arith.cmpi sgt, %0, %568 : vector<5x1xi32>
    %c1_i32_118 = arith.constant 1 : i32
    %570 = vector.broadcast %c1_i32_118 : i32 to vector<5x1xi32>
    %571 = arith.cmpi sgt, %0, %570 : vector<5x1xi32>
    %572 = vector.extract_strided_slice %545 {offsets = [0, 0], sizes = [5, 16], strides = [1, 1]} : vector<5x32xf32> to vector<5x16xf32>
    %573 = vector.extract_strided_slice %545 {offsets = [0, 16], sizes = [5, 16], strides = [1, 1]} : vector<5x32xf32> to vector<5x16xf32>
    %574 = arith.addf %560, %565 : vector<5x64xf32>
    %575 = vector.extract_strided_slice %574 {offsets = [0, 0], sizes = [5, 16], strides = [1, 1]} : vector<5x64xf32> to vector<5x16xf32>
    %576 = arith.negf %575 : vector<5x16xf32>
    %577 = math.exp %576 : vector<5x16xf32>
    %cst_119 = arith.constant 1.000000e+00 : f32
    %578 = vector.broadcast %cst_119 : f32 to vector<5x16xf32>
    %579 = arith.addf %578, %577 : vector<5x16xf32>
    %580 = arith.divf %578, %579 : vector<5x16xf32>
    %581 = vector.extract_strided_slice %574 {offsets = [0, 16], sizes = [5, 16], strides = [1, 1]} : vector<5x64xf32> to vector<5x16xf32>
    %582 = arith.negf %581 : vector<5x16xf32>
    %583 = math.exp %582 : vector<5x16xf32>
    %cst_120 = arith.constant 1.000000e+00 : f32
    %584 = vector.broadcast %cst_120 : f32 to vector<5x16xf32>
    %585 = arith.addf %584, %583 : vector<5x16xf32>
    %586 = arith.divf %584, %585 : vector<5x16xf32>
    %587 = vector.extract_strided_slice %574 {offsets = [0, 32], sizes = [5, 16], strides = [1, 1]} : vector<5x64xf32> to vector<5x16xf32>
    %588 = math.tanh %587 : vector<5x16xf32>
    %589 = vector.extract_strided_slice %574 {offsets = [0, 48], sizes = [5, 16], strides = [1, 1]} : vector<5x64xf32> to vector<5x16xf32>
    %590 = arith.negf %589 : vector<5x16xf32>
    %591 = math.exp %590 : vector<5x16xf32>
    %cst_121 = arith.constant 1.000000e+00 : f32
    %592 = vector.broadcast %cst_121 : f32 to vector<5x16xf32>
    %593 = arith.addf %592, %591 : vector<5x16xf32>
    %594 = arith.divf %592, %593 : vector<5x16xf32>
    %595 = arith.mulf %586, %572 : vector<5x16xf32>
    %596 = arith.mulf %580, %588 : vector<5x16xf32>
    %597 = arith.addf %595, %596 : vector<5x16xf32>
    %598 = math.tanh %597 : vector<5x16xf32>
    %599 = arith.mulf %594, %598 : vector<5x16xf32>
    %600 = arith.addf %561, %566 : vector<5x64xf32>
    %601 = vector.extract_strided_slice %600 {offsets = [0, 0], sizes = [5, 16], strides = [1, 1]} : vector<5x64xf32> to vector<5x16xf32>
    %602 = arith.negf %601 : vector<5x16xf32>
    %603 = math.exp %602 : vector<5x16xf32>
    %cst_122 = arith.constant 1.000000e+00 : f32
    %604 = vector.broadcast %cst_122 : f32 to vector<5x16xf32>
    %605 = arith.addf %604, %603 : vector<5x16xf32>
    %606 = arith.divf %604, %605 : vector<5x16xf32>
    %607 = vector.extract_strided_slice %600 {offsets = [0, 16], sizes = [5, 16], strides = [1, 1]} : vector<5x64xf32> to vector<5x16xf32>
    %608 = arith.negf %607 : vector<5x16xf32>
    %609 = math.exp %608 : vector<5x16xf32>
    %cst_123 = arith.constant 1.000000e+00 : f32
    %610 = vector.broadcast %cst_123 : f32 to vector<5x16xf32>
    %611 = arith.addf %610, %609 : vector<5x16xf32>
    %612 = arith.divf %610, %611 : vector<5x16xf32>
    %613 = vector.extract_strided_slice %600 {offsets = [0, 32], sizes = [5, 16], strides = [1, 1]} : vector<5x64xf32> to vector<5x16xf32>
    %614 = math.tanh %613 : vector<5x16xf32>
    %615 = vector.extract_strided_slice %600 {offsets = [0, 48], sizes = [5, 16], strides = [1, 1]} : vector<5x64xf32> to vector<5x16xf32>
    %616 = arith.negf %615 : vector<5x16xf32>
    %617 = math.exp %616 : vector<5x16xf32>
    %cst_124 = arith.constant 1.000000e+00 : f32
    %618 = vector.broadcast %cst_124 : f32 to vector<5x16xf32>
    %619 = arith.addf %618, %617 : vector<5x16xf32>
    %620 = arith.divf %618, %619 : vector<5x16xf32>
    %621 = arith.mulf %612, %573 : vector<5x16xf32>
    %622 = arith.mulf %606, %614 : vector<5x16xf32>
    %623 = arith.addf %621, %622 : vector<5x16xf32>
    %624 = math.tanh %623 : vector<5x16xf32>
    %625 = arith.mulf %620, %624 : vector<5x16xf32>
    %626 = vector.shape_cast %569 : vector<5x1xi1> to vector<5x1xi1>
    %627 = vector.broadcast %626 : vector<5x1xi1> to vector<5x16xi1>
    %628 = arith.select %627, %599, %567 : vector<5x16xi1>, vector<5x16xf32>
    %629 = vector.shape_cast %569 : vector<5x1xi1> to vector<5x1xi1>
    %630 = vector.broadcast %629 : vector<5x1xi1> to vector<5x16xi1>
    %631 = arith.select %630, %597, %572 : vector<5x16xi1>, vector<5x16xf32>
    %cst_125 = arith.constant 0.000000e+00 : f32
    %632 = vector.shape_cast %571 : vector<5x1xi1> to vector<5x1xi1>
    %633 = vector.broadcast %632 : vector<5x1xi1> to vector<5x16xi1>
    %634 = vector.broadcast %cst_125 : f32 to vector<5x16xf32>
    %635 = arith.select %633, %625, %634 : vector<5x16xi1>, vector<5x16xf32>
    %cst_126 = arith.constant 0.000000e+00 : f32
    %636 = vector.shape_cast %571 : vector<5x1xi1> to vector<5x1xi1>
    %637 = vector.broadcast %636 : vector<5x1xi1> to vector<5x16xi1>
    %638 = vector.broadcast %cst_126 : f32 to vector<5x16xf32>
    %639 = arith.select %637, %623, %638 : vector<5x16xi1>, vector<5x16xf32>
    %640 = tpu.concatenate %628, %635 in 1 : vector<5x16xf32>, vector<5x16xf32> -> vector<5x32xf32>
    %641 = tpu.concatenate %631, %639 in 1 : vector<5x16xf32>, vector<5x16xf32> -> vector<5x32xf32>
    %c1_i32_127 = arith.constant 1 : i32
    %642 = vector.broadcast %c1_i32_127 : i32 to vector<5x1xi32>
    %643 = arith.subi %0, %642 : vector<5x1xi32>
    %c2_i32_128 = arith.constant 2 : i32
    %644 = vector.broadcast %c2_i32_128 : i32 to vector<5x1xi32>
    %645 = arith.cmpi eq, %643, %644 : vector<5x1xi32>
    %646 = vector.shape_cast %645 : vector<5x1xi1> to vector<5x1xi1>
    %647 = vector.broadcast %646 : vector<5x1xi1> to vector<5x16xi1>
    %648 = arith.select %647, %628, %552 : vector<5x16xi1>, vector<5x16xf32>
    %c1_i32_129 = arith.constant 1 : i32
    %649 = vector.broadcast %c1_i32_129 : i32 to vector<5x1xi32>
    %650 = arith.subi %0, %649 : vector<5x1xi32>
    %c1_i32_130 = arith.constant 1 : i32
    %651 = vector.broadcast %c1_i32_130 : i32 to vector<5x1xi32>
    %652 = arith.cmpi eq, %650, %651 : vector<5x1xi32>
    %653 = vector.shape_cast %652 : vector<5x1xi1> to vector<5x1xi1>
    %654 = vector.broadcast %653 : vector<5x1xi1> to vector<5x16xi1>
    %655 = arith.select %654, %635, %559 : vector<5x16xi1>, vector<5x16xf32>
    %656 = vector.extract_strided_slice %363 {offsets = [15, 0], sizes = [5, 64], strides = [1, 1]} : vector<20x128xf32> to vector<5x64xf32>
    %657 = vector.extract_strided_slice %363 {offsets = [0, 64], sizes = [5, 64], strides = [1, 1]} : vector<20x128xf32> to vector<5x64xf32>
    %cst_131 = arith.constant dense<0.000000e+00> : vector<5x128xf32>
    %658 = tpu.matmul %640, %356, %cst_131 {dimension_numbers = #tpu.dot_dimension_numbers<[1], [0], [0], [1], [0, 0, 1, 1], [], []>} : vector<5x32xf32>, vector<32x128xf32>, vector<5x128xf32> -> vector<5x128xf32>
    %659 = vector.broadcast %357 : vector<1x128xf32> to vector<5x128xf32>
    %660 = arith.addf %658, %659 : vector<5x128xf32>
    %661 = vector.extract_strided_slice %660 {offsets = [0, 0], sizes = [5, 64], strides = [1, 1]} : vector<5x128xf32> to vector<5x64xf32>
    %662 = vector.extract_strided_slice %660 {offsets = [0, 64], sizes = [5, 64], strides = [1, 1]} : vector<5x128xf32> to vector<5x64xf32>
    %663 = vector.extract_strided_slice %640 {offsets = [0, 0], sizes = [5, 16], strides = [1, 1]} : vector<5x32xf32> to vector<5x16xf32>
    %c3_i32_132 = arith.constant 3 : i32
    %664 = vector.broadcast %c3_i32_132 : i32 to vector<5x1xi32>
    %665 = arith.cmpi sgt, %0, %664 : vector<5x1xi32>
    %c0_i32_133 = arith.constant 0 : i32
    %666 = vector.broadcast %c0_i32_133 : i32 to vector<5x1xi32>
    %667 = arith.cmpi sgt, %0, %666 : vector<5x1xi32>
    %668 = vector.extract_strided_slice %641 {offsets = [0, 0], sizes = [5, 16], strides = [1, 1]} : vector<5x32xf32> to vector<5x16xf32>
    %669 = vector.extract_strided_slice %641 {offsets = [0, 16], sizes = [5, 16], strides = [1, 1]} : vector<5x32xf32> to vector<5x16xf32>
    %670 = arith.addf %656, %661 : vector<5x64xf32>
    %671 = vector.extract_strided_slice %670 {offsets = [0, 0], sizes = [5, 16], strides = [1, 1]} : vector<5x64xf32> to vector<5x16xf32>
    %672 = arith.negf %671 : vector<5x16xf32>
    %673 = math.exp %672 : vector<5x16xf32>
    %cst_134 = arith.constant 1.000000e+00 : f32
    %674 = vector.broadcast %cst_134 : f32 to vector<5x16xf32>
    %675 = arith.addf %674, %673 : vector<5x16xf32>
    %676 = arith.divf %674, %675 : vector<5x16xf32>
    %677 = vector.extract_strided_slice %670 {offsets = [0, 16], sizes = [5, 16], strides = [1, 1]} : vector<5x64xf32> to vector<5x16xf32>
    %678 = arith.negf %677 : vector<5x16xf32>
    %679 = math.exp %678 : vector<5x16xf32>
    %cst_135 = arith.constant 1.000000e+00 : f32
    %680 = vector.broadcast %cst_135 : f32 to vector<5x16xf32>
    %681 = arith.addf %680, %679 : vector<5x16xf32>
    %682 = arith.divf %680, %681 : vector<5x16xf32>
    %683 = vector.extract_strided_slice %670 {offsets = [0, 32], sizes = [5, 16], strides = [1, 1]} : vector<5x64xf32> to vector<5x16xf32>
    %684 = math.tanh %683 : vector<5x16xf32>
    %685 = vector.extract_strided_slice %670 {offsets = [0, 48], sizes = [5, 16], strides = [1, 1]} : vector<5x64xf32> to vector<5x16xf32>
    %686 = arith.negf %685 : vector<5x16xf32>
    %687 = math.exp %686 : vector<5x16xf32>
    %cst_136 = arith.constant 1.000000e+00 : f32
    %688 = vector.broadcast %cst_136 : f32 to vector<5x16xf32>
    %689 = arith.addf %688, %687 : vector<5x16xf32>
    %690 = arith.divf %688, %689 : vector<5x16xf32>
    %691 = arith.mulf %682, %668 : vector<5x16xf32>
    %692 = arith.mulf %676, %684 : vector<5x16xf32>
    %693 = arith.addf %691, %692 : vector<5x16xf32>
    %694 = math.tanh %693 : vector<5x16xf32>
    %695 = arith.mulf %690, %694 : vector<5x16xf32>
    %696 = arith.addf %657, %662 : vector<5x64xf32>
    %697 = vector.extract_strided_slice %696 {offsets = [0, 0], sizes = [5, 16], strides = [1, 1]} : vector<5x64xf32> to vector<5x16xf32>
    %698 = arith.negf %697 : vector<5x16xf32>
    %699 = math.exp %698 : vector<5x16xf32>
    %cst_137 = arith.constant 1.000000e+00 : f32
    %700 = vector.broadcast %cst_137 : f32 to vector<5x16xf32>
    %701 = arith.addf %700, %699 : vector<5x16xf32>
    %702 = arith.divf %700, %701 : vector<5x16xf32>
    %703 = vector.extract_strided_slice %696 {offsets = [0, 16], sizes = [5, 16], strides = [1, 1]} : vector<5x64xf32> to vector<5x16xf32>
    %704 = arith.negf %703 : vector<5x16xf32>
    %705 = math.exp %704 : vector<5x16xf32>
    %cst_138 = arith.constant 1.000000e+00 : f32
    %706 = vector.broadcast %cst_138 : f32 to vector<5x16xf32>
    %707 = arith.addf %706, %705 : vector<5x16xf32>
    %708 = arith.divf %706, %707 : vector<5x16xf32>
    %709 = vector.extract_strided_slice %696 {offsets = [0, 32], sizes = [5, 16], strides = [1, 1]} : vector<5x64xf32> to vector<5x16xf32>
    %710 = math.tanh %709 : vector<5x16xf32>
    %711 = vector.extract_strided_slice %696 {offsets = [0, 48], sizes = [5, 16], strides = [1, 1]} : vector<5x64xf32> to vector<5x16xf32>
    %712 = arith.negf %711 : vector<5x16xf32>
    %713 = math.exp %712 : vector<5x16xf32>
    %cst_139 = arith.constant 1.000000e+00 : f32
    %714 = vector.broadcast %cst_139 : f32 to vector<5x16xf32>
    %715 = arith.addf %714, %713 : vector<5x16xf32>
    %716 = arith.divf %714, %715 : vector<5x16xf32>
    %717 = arith.mulf %708, %669 : vector<5x16xf32>
    %718 = arith.mulf %702, %710 : vector<5x16xf32>
    %719 = arith.addf %717, %718 : vector<5x16xf32>
    %720 = math.tanh %719 : vector<5x16xf32>
    %721 = arith.mulf %716, %720 : vector<5x16xf32>
    %722 = vector.shape_cast %665 : vector<5x1xi1> to vector<5x1xi1>
    %723 = vector.broadcast %722 : vector<5x1xi1> to vector<5x16xi1>
    %724 = arith.select %723, %695, %663 : vector<5x16xi1>, vector<5x16xf32>
    %cst_140 = arith.constant 0.000000e+00 : f32
    %725 = vector.shape_cast %667 : vector<5x1xi1> to vector<5x1xi1>
    %726 = vector.broadcast %725 : vector<5x1xi1> to vector<5x16xi1>
    %727 = vector.broadcast %cst_140 : f32 to vector<5x16xf32>
    %728 = arith.select %726, %721, %727 : vector<5x16xi1>, vector<5x16xf32>
    %c1_i32_141 = arith.constant 1 : i32
    %729 = vector.broadcast %c1_i32_141 : i32 to vector<5x1xi32>
    %730 = arith.subi %0, %729 : vector<5x1xi32>
    %c3_i32_142 = arith.constant 3 : i32
    %731 = vector.broadcast %c3_i32_142 : i32 to vector<5x1xi32>
    %732 = arith.cmpi eq, %730, %731 : vector<5x1xi32>
    %733 = vector.shape_cast %732 : vector<5x1xi1> to vector<5x1xi1>
    %734 = vector.broadcast %733 : vector<5x1xi1> to vector<5x16xi1>
    %735 = arith.select %734, %724, %648 : vector<5x16xi1>, vector<5x16xf32>
    %c1_i32_143 = arith.constant 1 : i32
    %736 = vector.broadcast %c1_i32_143 : i32 to vector<5x1xi32>
    %737 = arith.subi %0, %736 : vector<5x1xi32>
    %c0_i32_144 = arith.constant 0 : i32
    %738 = vector.broadcast %c0_i32_144 : i32 to vector<5x1xi32>
    %739 = arith.cmpi eq, %737, %738 : vector<5x1xi32>
    %740 = vector.shape_cast %739 : vector<5x1xi1> to vector<5x1xi1>
    %741 = vector.broadcast %740 : vector<5x1xi1> to vector<5x16xi1>
    %742 = arith.select %741, %728, %655 : vector<5x16xi1>, vector<5x16xf32>
    %743 = tpu.concatenate %735, %742 in 1 : vector<5x16xf32>, vector<5x16xf32> -> vector<5x32xf32>
    %c0_145 = arith.constant 0 : index
    %c0_146 = arith.constant 0 : index
    %744 = vector.load %arg10[%c0_145, %c0_146] : memref<5x32xf32, #tpu.memory_space<vmem>>, vector<5x32xf32>
    tpu.vector_store %arg10[%c0_145, %c0_146], %743 {strides = array<i32>} : memref<5x32xf32, #tpu.memory_space<vmem>>, vector<5x32xf32>,
    return
  }
}

</mosaic_0001>

<bundles_post_ra>
// kernel: tpu_custom_call.1
= control target key start
LH: loop header
LB: loop body
LE: loop exit
PB: predicated region body
PF: predicated region fallthrough
CT: control target
= control target key end

     0   :  { %15 = vsyncpa [#allocation5], 0  ;;  %s3230_s0 = inlined_call_operand.hbm [shape: f32[20,32], index: 0, kind: input, shape index: {}]   ;;  %s3231_s1 = inlined_call_operand.vmem [shape: s32[5,1], index: 1, kind: input, shape index: {}]   ;;  %s3232_s2 = inlined_call_operand.hbm [shape: f32[32,128], index: 2, kind: input, shape index: {}]   ;;  %s3233_s3 = inlined_call_operand.vmem [shape: f32[1,128], index: 3, kind: input, shape index: {}]   ;;  %s3234_s4 = inlined_call_operand.hbm [shape: f32[32,128], index: 4, kind: input, shape index: {}]   ;;  %s3235_s5 = inlined_call_operand.vmem [shape: f32[1,128], index: 5, kind: input, shape index: {}]   ;;  %s3236_s6 = inlined_call_operand.hbm [shape: f32[32,128], index: 6, kind: input, shape index: {}]   ;;  %s3237_s7 = inlined_call_operand.vmem [shape: f32[1,128], index: 7, kind: input, shape index: {}]   ;;  %s3238_s8 = inlined_call_operand.vmem [shape: f32[32,128], index: 8, kind: input, shape index: {}]   ;;  %s3239_s9 = inlined_call_operand.vmem [shape: f32[1,128], index: 9, kind: input, shape index: {}]   ;;  %s3240_s10 = inlined_call_operand.hbm [shape: f32[5,32], index: 10, kind: output, shape index: {}]  }
   0x1   :  { %16 = vsyncpa [#allocation8], 0 }
   0x2   :  { %17 = vsyncpa [#allocation11], 0 }
   0x3   :  { %18 = vsyncpa [#allocation6], 0  ;;  %s2575_s13 = smov [#allocation7]   ;;  %s2576_s15 = smov [#allocation4]  }
   0x4   :  { %s38_s14 = sshll.u32 %s2575_s13, 4  ;;  %s24_s16 = sshll.u32 %s2576_s15, 4  ;;  %s39_s14 = int_to_ptr.vmem [resolvable:$true] %s38_s14  ;;  %s2648_s16 = int_to_ptr.vmem [resolvable:$true] %s24_s16 }
   0x5   :  { %s2457_s19 = scalar_lea.hbm %s3232_s2, 512 }
   0x6   :  { %p2458_p0 = scmp.ne.s32.totalorder %s3232_s2, %s2457_s19  ;;  %p2461_p1 = scmp.lt.u32.totalorder %s2457_s19, %s3232_s2 }
   0x8   :  { %p2463_p2 = pnand %p2461_p1, %p2458_p0 }
   0xa   :  { %2466 = shalt.err (!%p2463_p2)
}
   0xb   :  { %s2467_s24 = scalar_lea.vmem %s39_s14, 512  ;;  %p2472_p4 = scmp.lt.s32.totalorder %s39_s14, %s39_s14 }
   0xc   :  { %p2468_p3 = scmp.ne.s32.totalorder %s39_s14, %s2467_s24  ;;  %p2473_p5 = scmp.lt.s32.totalorder %s2467_s24, %s2467_s24 }
   0xe   :  { %p2474_p6 = por %p2473_p5, %p2472_p4 }
  0x10   :  { %p2475_p7 = pnand %p2474_p6, %p2468_p3 }
  0x12   :  { %2478 = shalt.err (!%p2475_p7)
}
  0x13   :  { %s2577_s25 = smov 128   ;;  %s2578_s26 = smov 8  }
  0x14   :  { %44 = dma.hbm_to_vmem [thread:$0]  %s3232_s2, 512, %s39_s14, [#allocation8], %s2577_s25, %s2577_s25, %s2578_s26  }
  0x15   :  { %s2479_s11 = scalar_lea.hbm %s3230_s0, 384 }
  0x16   :  { %p2480_p8 = scmp.ne.s32.totalorder %s3230_s0, %s2479_s11  ;;  %p2483_p9 = scmp.lt.u32.totalorder %s2479_s11, %s3230_s0 }
  0x18   :  { %p2485_p10 = pnand %p2483_p9, %p2480_p8 }
  0x1a   :  { %2488 = shalt.err (!%p2485_p10)
}
  0x1b   :  { %s2489_s18 = scalar_lea.vmem %s2648_s16, 384  ;;  %p2494_p12 = scmp.lt.s32.totalorder %s2648_s16, %s2648_s16 }
  0x1c   :  { %p2490_p11 = scmp.ne.s32.totalorder %s2648_s16, %s2489_s18  ;;  %p2495_p13 = scmp.lt.s32.totalorder %s2489_s18, %s2489_s18 }
  0x1e   :  { %p2496_p0 = por %p2495_p13, %p2494_p12 }
  0x20   :  { %p2497_p1 = pnand %p2496_p0, %p2490_p11 }
  0x22   :  { %2500 = shalt.err (!%p2497_p1)
}
  0x23   :  { %30 = dma.hbm_to_vmem [thread:$0]  %s3230_s0, 384, %s2648_s16, [#allocation5], %s2577_s25, %s2577_s25, %s2578_s26  }
  0x24   :  { %s2579_s19 = smov [#allocation9]   ;;  %s2580_s21 = smov [#allocation10]  }
  0x25   :  { %s52_s20 = sshll.u32 %s2579_s19, 4  ;;  %s66_s22 = sshll.u32 %s2580_s21, 4  ;;  %s53_s20 = int_to_ptr.vmem [resolvable:$true] %s52_s20  ;;  %s2685_s22 = int_to_ptr.vmem [resolvable:$true] %s66_s22 }
  0x26   :  { %s2501_s27 = scalar_lea.hbm %s3234_s4, 512 }
  0x27   :  { %p2502_p2 = scmp.ne.s32.totalorder %s3234_s4, %s2501_s27  ;;  %p2505_p3 = scmp.lt.u32.totalorder %s2501_s27, %s3234_s4 }
  0x29   :  { %p2507_p4 = pnand %p2505_p3, %p2502_p2 }
  0x2b   :  { %2510 = shalt.err (!%p2507_p4)
}
  0x2c   :  { %s2511_s0 = scalar_lea.vmem %s53_s20, 512  ;;  %p2516_p6 = scmp.lt.s32.totalorder %s53_s20, %s53_s20 }
  0x2d   :  { %p2512_p5 = scmp.ne.s32.totalorder %s53_s20, %s2511_s0  ;;  %p2517_p7 = scmp.lt.s32.totalorder %s2511_s0, %s2511_s0 }
  0x2f   :  { %p2518_p8 = por %p2517_p7, %p2516_p6 }
  0x31   :  { %p2519_p9 = pnand %p2518_p8, %p2512_p5 }
  0x33   :  { %2522 = shalt.err (!%p2519_p9)
}
  0x34   :  { %58 = dma.hbm_to_vmem [thread:$0]  %s3234_s4, 512, %s53_s20, [#allocation8], %s2577_s25, %s2577_s25, %s2578_s26  }
  0x35   :  { %s2523_s17 = scalar_lea.hbm %s3236_s6, 512 }
  0x36   :  { %p2524_p10 = scmp.ne.s32.totalorder %s3236_s6, %s2523_s17  ;;  %p2527_p11 = scmp.lt.u32.totalorder %s2523_s17, %s3236_s6 }
  0x38   :  { %p2529_p12 = pnand %p2527_p11, %p2524_p10 }
  0x3a   :  { %2532 = shalt.err (!%p2529_p12)
}
  0x3b   :  { %s2533_s21 = scalar_lea.vmem %s2685_s22, 512  ;;  %p2538_p0 = scmp.lt.s32.totalorder %s2685_s22, %s2685_s22 }
  0x3c   :  { %p2534_p13 = scmp.ne.s32.totalorder %s2685_s22, %s2533_s21  ;;  %p2539_p1 = scmp.lt.s32.totalorder %s2533_s21, %s2533_s21 }
  0x3e   :  { %p2540_p2 = por %p2539_p1, %p2538_p0 }
  0x40   :  { %p2541_p3 = pnand %p2540_p2, %p2534_p13 }
  0x42   :  { %2544 = shalt.err (!%p2541_p3)
}
  0x43   :  { %72 = dma.hbm_to_vmem [thread:$0]  %s3236_s6, 512, %s2685_s22, [#allocation11], %s2577_s25, %s2577_s25, %s2578_s26  }
  0x44   :  { %2567 = dma.done.wait [#allocation5], 384  }
  0x45   :  { %2568 = vsyncadd [#allocation5], 4294966912 }
  0x46   :  { %2569 = dma.done.wait [#allocation8], 1024  }
  0x47   :  { %2570 = vsyncadd [#allocation8], 4294966272 }
  0x48   :  { %2571 = dma.done.wait [#allocation11], 512  }
  0x49   :  { %2572 = vsyncadd [#allocation11], 4294966784  ;;  %v2581_v0 = vmov 0.0|0.0   ;;  %vm2582_vm0 = vmmov 0   ;;  %v2583_v1 = vmov 0.0   ;;  %v92_v2 = vld [vmem:[#allocation7] sm:$0xff] }
  0x4a   :  { %2184 = vmatprep.subr.bf16.mxu0 %v2581_v0  ;;  %2190 = vmatprep.subr.bf16.mxu1 %v2581_v0  ;;  %v93_v3 = vld [vmem:[#allocation7 + $0x8] sm:$0xff]  ;;  %v97_v4 = vld [vmem:[#allocation9] sm:$0xff]  ;;  %v94_v7 = vld [vmem:[#allocation7 + $0x10] sm:$0xff]  ;;  %vm111_vm1 = vcmask 261120   ;;  %v2586_v52 = vmov 0   ;;  %vm374_vm2 = vcmask 1040384  }
  0x4b   :  { %2070 = vmatprep.mubr.msk.f32.mxu0 %vm2582_vm0, %v2583_v1  ;;  %2087 = vmatprep.mubr.msk.f32.mxu1 %vm2582_vm0, %v2583_v1  ;;  %v2185_v5 = vpack.c.bf16 %v93_v3, %v92_v2  ;;  %v98_v6 = vld [vmem:[#allocation9 + $0x8] sm:$0xff]  ;;  %v95_v8 = vld [vmem:[#allocation7 + $0x18] sm:$0xff]  ;;  %v99_v10 = vld [vmem:[#allocation9 + $0x10] sm:$0xff]  ;;  %s2587_s27 = smov 32   ;;  %s2588_s28 = smov 80   ;;  %vm410_vm6 = vcmask 126976  }
  0x4c   :  { %v2728_v9 = vpack.c.bf16 %v98_v6, %v97_v4  ;;  %v100_v11 = vld [vmem:[#allocation9 + $0x18] sm:$0xff]  ;;  %v2188_v12 = vpack.c.bf16 %v95_v8, %v94_v7  ;;  %v102_v14 = vld [vmem:[#allocation4] sm:$0xff]  ;;  %v103_v15 = vld [vmem:[#allocation4 + $0x8] sm:$0xff]  ;;  %2262 = vset.pattern.permute.xlu0 %v2586_v52  ;;  %2263 = vset.pattern.permute.xlu1 %v2586_v52  ;;  %s2589_s29 = smov 48   ;;  %s2590_s30 = smov 112   ;;  %vm399_vm8 = vcmask 130048  }
  0x4d   :  { %2186 = vmatpush3.bf16.msra.mxu0 %v2185_v5  ;;  %v2732_v13 = vpack.c.bf16 %v100_v11, %v99_v10  ;;  %v104_v16 = vld [vmem:[#allocation4 + $0x10] sm:$0xf]  ;;  %s2591_s11 = smov 64   ;;  %vm584_vm10 = vcmask 1042432  }
  0x4e   :  { %2192 = vmatpush3.bf16.msra.mxu1 %v2728_v9  ;;  %2187 = vmatprep.subr.bf16.mxu0 %v2581_v0  ;;  %v2761_v17 = vld [vmem:[%s3235_s5] ss:$0 sm:$0xff]  ;;  %s2585_s5 = smov 16  }
  0x4f   :  { %2193 = vmatprep.subr.bf16.mxu1 %v2581_v0  ;;  %v1967_v23 = vld [vmem:[%s3233_s3] ss:$0 sm:$0xff]  ;;  %s2584_s3 = smov 96  }
  0x50   :  { %v2787_v5 = vld [vmem:[%s3231_s1] sm:$0x1f] }
  0x51   :  { %2189 = vmatpush3.bf16.msra.mxu0 %v2188_v12  ;;  %vm280_vm3 = vcmp.gt.s32.totalorder %v2787_v5, 0  ;;  %vm281_vm4 = vcmp.gt.s32.totalorder %v2787_v5, 3  ;;  %vm487_vm9 = vcmp.gt.s32.totalorder %v2787_v5, 2  ;;  %vm486_vm11 = vcmp.gt.s32.totalorder %v2787_v5, 1 }
  0x52   :  { %2195 = vmatpush3.bf16.msra.mxu1 %v2732_v13  ;;  %2202 = vmatprep.subr.bf16.mxu0 %v2581_v0  ;;  %v360_v10 = vsel %vm280_vm3, 1, %v2586_v52  ;;  %v367_v12 = vsel %vm281_vm4, 1, %v2586_v52 }
  0x53   :  { %2196 = vmatprep.subr.bf16.mxu1 %v2581_v0 }
  0x54   :  { %2071 = vmatmul.mubr.msk.f32.vlgmr.msra.gmra.mrb[0].mxu0 %vm111_vm1, %v102_v14 }
  0x55   :  { %2088 = vmatmul.mubr.f32.vlgmr.msra.gmra.mrb[0].mxu1 %v2583_v1  ;;  %2073 = vmatprep.mubr.msk.f32.mxu0 %vm2582_vm0, %v2583_v1 }
  0x56   :  { %2198 = vmatpush3.bf16.msra.mxu1 %v2728_v9  ;;  %2098 = vmatprep.mubr.msk.f32.mxu1 %vm2582_vm0, %v2583_v1 }
  0x57   :  { %2199 = vmatprep.subr.bf16.mxu1 %v2581_v0  ;;  %2204 = vmatpush3.bf16.msra.mxu0 %v2728_v9 }
  0x58   :  { %2074 = vmatmul.mubr.msk.f32.gmra.mrb[2].mxu0 %vm111_vm1, %v103_v15  ;;  %2205 = vmatprep.subr.bf16.mxu0 %v2581_v0 }
  0x59   :  { %2076 = vmatprep.mubr.msk.f32.mxu0 %vm2582_vm0, %v2583_v1 }
  0x5a   :  { %2201 = vmatpush3.bf16.msra.mxu1 %v2732_v13 }
  0x5b   :  { %2207 = vmatpush3.bf16.msra.mxu0 %v2732_v13  ;;  %2208 = vmatprep.subr.bf16.mxu1 %v2581_v0 }
  0x5c   :  { %2077 = vmatmul.mubr.msk.f32.gmra.mrb[4].mxu0 %vm111_vm1, %v104_v16  ;;  %2214 = vmatprep.subr.bf16.mxu0 %v2581_v0 }
  0x5d   :  { %2109 = vmatprep.mubr.msk.f32.mxu0 %vm2582_vm0, %v2583_v1 }
 0x127   :  { %v187_v18 = vpop.f32.mrb[0].mxu0 }
 0x128   :  { %v276_v19 = vpop.f32.mrb[0].mxu1  ;;  %v2072_v20 = vpop.f32.mrb[1].mxu0  ;;  %v2770_v30 = vadd.f32 %v1967_v23, %v187_v18 }
 0x129   :  { %v277_v21 = vadd.f32 %v2761_v17, %v276_v19  ;;  %v2089_v22 = vpop.f32.mrb[1].mxu1 }
 0x12b   :  { %v308_v24 = vrot.slane %v277_v21, 1  ;;  %v192_v25 = vpop.f32.mrb[2].mxu0  ;;  %v282_v34 = vadd.f32 %v277_v21, %v2770_v30 }
 0x12c   :  { %v2767_v26 = vadd.f32 %v1967_v23, %v192_v25  ;;  %v2075_v27 = vpop.f32.mrb[3].mxu0 }
 0x12d   :  { %v1972_v40 = vmul.f32 -1.442695, %v282_v34 }
 0x12e   :  { %v310_v28 = vadd.f32 %v308_v24, %v2767_v26 }
 0x12f   :  { %v197_v29 = vpop.f32.mrb[4].mxu0 }
 0x130   :  { %v2772_v31 = vadd.f32 %v1967_v23, %v197_v29  ;;  %v2078_v32 = vpop.f32.mrb[5].mxu0  ;;  %2264 = vtanh.f32 %v310_v28  ;;  %v1973_v38 = vmul.f32 -1.442695, %v310_v28 }
 0x132   :  { %v311_v33 = vadd.f32 %v308_v24, %v2772_v31 }
 0x134   :  { %2266 = vtanh.f32 %v311_v33  ;;  %v1974_v39 = vmul.f32 -1.442695, %v311_v33 }
 0x135   :  { %2268 = vtanh.f32 %v282_v34 }
 0x136   :  { %2270 = vpow2.f32 %v1973_v38 }
 0x137   :  { %2272 = vpow2.f32 %v1974_v39 }
 0x138   :  { %2274 = vpow2.f32 %v1972_v40 }
 0x13a   :  { %v2265_v35 = vpop.eup %2264 }
 0x13b   :  { %330 = vrot.lane.b32.xlu0 %v2265_v35, %s2584_s3 }
 0x13e   :  { %v2267_v36 = vpop.eup %2266 }
 0x13f   :  { %332 = vrot.lane.b32.xlu0 %v2267_v36, %s2584_s3  ;;  %v2269_v37 = vpop.eup %2268 }
 0x140   :  { %v2271_v41 = vpop.eup %2270 }
 0x141   :  { %v318_v42 = vadd.f32 1.0, %v2271_v41  ;;  %v2273_v43 = vpop.eup %2272 }
 0x142   :  { %v319_v44 = vadd.f32 1.0, %v2273_v43  ;;  %v2275_v45 = vpop.eup %2274 }
 0x143   :  { %292 = vrot.lane.b32.xlu0 %v2269_v37, %s2584_s3  ;;  %2276 = vrcp.f32 %v318_v42  ;;  %v286_v46 = vadd.f32 1.0, %v2275_v45 }
 0x144   :  { %2278 = vrcp.f32 %v319_v44 }
 0x145   :  { %2280 = vrcp.f32 %v286_v46 }
 0x14d   :  { %v2277_v47 = vpop.eup %2276 }
 0x14e   :  { %v2279_v50 = vpop.eup %2278  ;;  %v326_v57 = vmul.f32 0.0, %v2277_v47 }
 0x14f   :  { %v2281_v54 = vpop.eup %2280  ;;  %v327_v60 = vmul.f32 0.0, %v2279_v50 }
 0x150   :  { %v290_v4 = vmul.f32 0.0, %v2281_v54 }
 0x1ad   :  { %v331_v48 = vpop.permute.xlu0 %330 }
 0x1ae   :  { %v336_v49 = vmul.f32 %v2277_v47, %v331_v48 }
 0x1b0   :  { %340 = vrot.lane.b32.xlu1 %v336_v49, %s2585_s5 }
 0x1b1   :  { %v333_v51 = vpop.permute.xlu0 %332 }
 0x1b2   :  { %v337_v53 = vmul.f32 %v2279_v50, %v333_v51 }
 0x1b4   :  { %342 = vrot.lane.b32.xlu1 %v337_v53, %s2585_s5 }
 0x1b5   :  { %v293_v55 = vpop.permute.xlu0 %292 }
 0x1b6   :  { %v295_v56 = vmul.f32 %v2281_v54, %v293_v55 }
 0x1b8   :  { %297 = vrot.lane.b32.xlu1 %v295_v56, %s2585_s5 }
 0x222   :  { %v341_v58 = vpop.permute.xlu1 %340 }
 0x223   :  { %v346_v59 = vadd.f32 %v341_v58, %v326_v57 }
 0x225   :  { %2282 = vtanh.f32 %v346_v59  ;;  %v384_v63 = vrot.slane %v346_v59, 7 }
 0x226   :  { %v343_v61 = vpop.permute.xlu1 %342 }
 0x227   :  { %v347_v62 = vadd.f32 %v343_v61, %v327_v60 }
 0x229   :  { %2284 = vtanh.f32 %v347_v62  ;;  %v385_v2 = vrot.slane %v347_v62, 7 }
 0x22a   :  { %v298_v3 = vpop.permute.xlu1 %297 }
 0x22b   :  { %v386_v6 = vsel %vm374_vm2, %v384_v63, %v385_v2  ;;  %v300_v7 = vadd.f32 %v298_v3, %v290_v4 }
 0x22d   :  { %2286 = vtanh.f32 %v300_v7 }
 0x22f   :  { %v2283_v8 = vpop.eup %2282 }
 0x230   :  { %352 = vrot.lane.b32.xlu0 %v2283_v8, %s2587_s27 }
 0x233   :  { %v2285_v11 = vpop.eup %2284 }
 0x234   :  { %354 = vrot.lane.b32.xlu1 %v2285_v11, %s2587_s27  ;;  %362 = vperm.xlu0 %2262, %v360_v10  }
 0x237   :  { %v2287_v14 = vpop.eup %2286 }
 0x238   :  { %369 = vperm.xlu1 %2263, %v367_v12   ;;  %v601_v12 = vsel %vm487_vm9, 1, %v2586_v52 }
 0x23c   :  { %303 = vrot.lane.b32.xlu1 %v2287_v14, %s2587_s27 }
 0x2a2   :  { %v353_v15 = vpop.permute.xlu0 %352 }
 0x2a3   :  { %v358_v16 = vmul.f32 %v2277_v47, %v353_v15 }
 0x2a5   :  { %v375_v20 = vrot.slane %v358_v16, 7 }
 0x2a6   :  { %v355_v18 = vpop.permute.xlu1 %354 }
 0x2a7   :  { %v359_v19 = vmul.f32 %v2279_v50, %v355_v18 }
 0x2a9   :  { %v376_v21 = vrot.slane %v359_v19, 7 }
 0x2ab   :  { %v377_v22 = vsel %vm374_vm2, %v375_v20, %v376_v21 }
 0x2ac   :  { %378 = vrot.lane.b32.xlu0 %v377_v22, %s2585_s5 }
 0x2b3   :  { %v2801_v24 = vpop.permute.xlu0 %362 }
 0x2b4   :  { %vm364_vm5 = vcmp.eq.s32.totalorder %v2801_v24, 1 }
 0x2b5   :  { %v366_v33 = vsel %vm364_vm5, %v300_v7, 0.0 }
 0x2b7   :  { %v2799_v23 = vpop.permute.xlu1 %369 }
 0x2b8   :  { %vm371_vm7 = vcmp.eq.s32.totalorder %v2799_v23, 1 }
 0x2bb   :  { %v304_v25 = vpop.permute.xlu1 %303 }
 0x2bc   :  { %v306_v27 = vmul.f32 %v2281_v54, %v304_v25 }
 0x2be   :  { %v365_v28 = vsel %vm364_vm5, %v306_v27, 0.0 }
 0x2bf   :  { %392 = vrot.lane.b32.xlu1 %v365_v28, %s2588_s28 }
 0x2c3   :  { %387 = vrot.lane.b32.xlu1 %v386_v6, %s2589_s29 }
 0x31e   :  { %v379_v29 = vpop.permute.xlu0 %378 }
 0x31f   :  { %v381_v32 = vsel %vm371_vm7, %v379_v29, 0.0 }
 0x320   :  { %396 = vrot.lane.b32.xlu0 %v381_v32, %s2585_s5  ;;  %412 = vst.msk [vmem:[#allocation3 + $0xf] sm:$0x1f] %vm410_vm6, %v381_v32 }
 0x324   :  { %402 = vrot.lane.b32.xlu0 %v366_v33, %s2590_s30 }
 0x331   :  { %v393_v34 = vpop.permute.xlu1 %392 }
 0x332   :  { %411 = vst.msk [vmem:[#allocation2] sm:$0x1f] %vm410_vm6, %v393_v34 }
 0x335   :  { %v388_v35 = vpop.permute.xlu1 %387 }
 0x336   :  { %v390_v36 = vsel %vm371_vm7, %v388_v35, 0.0 }
 0x337   :  { %406 = vrot.lane.b32.xlu1 %v390_v36, %s2585_s5 }
 0x392   :  { %v397_v37 = vpop.permute.xlu0 %396 }
 0x393   :  { %v2821_v38 = vsel %vm399_vm8, %v393_v34, %v397_v37  ;;  %v577_v37 = vsel %vm486_vm11, 1, %v2586_v52 }
 0x394   :  { %2099 = vmatmul.mubr.msk.f32.vlgmr.msra.gmra.mrb[2].mxu1 %vm111_vm1, %v2821_v38 }
 0x395   :  { %2210 = vmatpush3.bf16.msra.mxu1 %v2728_v9  ;;  %2120 = vmatprep.mubr.msk.f32.mxu1 %vm2582_vm0, %v2583_v1 }
 0x396   :  { %2211 = vmatprep.subr.bf16.mxu1 %v2581_v0  ;;  %v403_v47 = vpop.permute.xlu0 %402 }
 0x399   :  { %2213 = vmatpush3.bf16.msra.mxu1 %v2732_v13 }
 0x39a   :  { %2220 = vmatprep.subr.bf16.mxu1 %v2581_v0 }
 0x3a9   :  { %v407_v46 = vpop.permute.xlu1 %406 }
 0x3aa   :  { %v2836_v48 = vsel %vm399_vm8, %v403_v47, %v407_v46 }
 0x3ab   :  { %v556_v49 = vrot.slane %v2836_v48, 6  ;;  %v508_v51 = vrot.slane %v2836_v48, 3 }
 0x467   :  { %v482_v39 = vpop.f32.mrb[2].mxu1 }
 0x468   :  { %v483_v40 = vadd.f32 %v2761_v17, %v482_v39  ;;  %v2100_v41 = vpop.f32.mrb[3].mxu1 }
 0x46a   :  { %v489_v42 = vrot.slane %v483_v40, 3  ;;  %v546_v43 = vrot.slane %v483_v40, 6 }
 0x46c   :  { %v491_v44 = vadd.f32 %v489_v42, %v2770_v30  ;;  %v548_v9 = vadd.f32 %v546_v43, %v2767_v26  ;;  %v492_v45 = vadd.f32 %v489_v42, %v2767_v26 }
 0x46e   :  { %2288 = vtanh.f32 %v491_v44  ;;  %v1978_v54 = vmul.f32 -1.442695, %v548_v9  ;;  %v1976_v55 = vmul.f32 -1.442695, %v491_v44  ;;  %v1977_v56 = vmul.f32 -1.442695, %v492_v45 }
 0x46f   :  { %2290 = vtanh.f32 %v548_v9 }
 0x470   :  { %2292 = vtanh.f32 %v492_v45 }
 0x471   :  { %2294 = vpow2.f32 %v1978_v54 }
 0x472   :  { %2296 = vpow2.f32 %v1976_v55 }
 0x473   :  { %2298 = vpow2.f32 %v1977_v56 }
 0x478   :  { %v2289_v13 = vpop.eup %2288 }
 0x479   :  { %516 = vrot.lane.b32.xlu1 %v2289_v13, %s2584_s3  ;;  %v2291_v50 = vpop.eup %2290 }
 0x47a   :  { %562 = vrot.lane.b32.xlu0 %v2291_v50, %s2584_s3  ;;  %v2293_v53 = vpop.eup %2292 }
 0x47b   :  { %v2295_v57 = vpop.eup %2294 }
 0x47c   :  { %v2297_v58 = vpop.eup %2296  ;;  %v552_v59 = vadd.f32 1.0, %v2295_v57 }
 0x47d   :  { %557 = vrot.lane.b32.xlu1 %v556_v49, %s2591_s11  ;;  %v2299_v60 = vpop.eup %2298  ;;  %v499_v61 = vadd.f32 1.0, %v2297_v58 }
 0x47e   :  { %518 = vrot.lane.b32.xlu0 %v2293_v53, %s2584_s3  ;;  %v500_v62 = vadd.f32 1.0, %v2299_v60  ;;  %2300 = vrcp.f32 %v552_v59 }
 0x47f   :  { %2302 = vrcp.f32 %v499_v61 }
 0x480   :  { %2304 = vrcp.f32 %v500_v62 }
 0x481   :  { %509 = vrot.lane.b32.xlu1 %v508_v51, %s2585_s5 }
 0x488   :  { %v2301_v63 = vpop.eup %2300 }
 0x489   :  { %v2303_v6 = vpop.eup %2302 }
 0x48a   :  { %v2305_v7 = vpop.eup %2304 }
 0x4eb   :  { %v517_v4 = vpop.permute.xlu1 %516 }
 0x4ec   :  { %v563_v2 = vpop.permute.xlu0 %562  ;;  %v522_v10 = vmul.f32 %v2303_v6, %v517_v4 }
 0x4ed   :  { %v565_v3 = vmul.f32 %v2301_v63, %v563_v2 }
 0x4ef   :  { %567 = vrot.lane.b32.xlu0 %v565_v3, %s2585_s5  ;;  %v558_v14 = vpop.permute.xlu1 %557 }
 0x4f0   :  { %v519_v8 = vpop.permute.xlu0 %518  ;;  %v560_v15 = vmul.f32 %v2301_v63, %v558_v14 }
 0x4f1   :  { %v523_v11 = vmul.f32 %v2305_v7, %v519_v8 }
 0x4f3   :  { %526 = vrot.lane.b32.xlu0 %v522_v10, %s2585_s5  ;;  %528 = vrot.lane.b32.xlu1 %v523_v11, %s2585_s5  ;;  %v510_v16 = vpop.permute.xlu1 %509 }
 0x4f4   :  { %v512_v20 = vmul.f32 %v2303_v6, %v510_v16  ;;  %v513_v21 = vmul.f32 %v2305_v7, %v510_v16 }
 0x4f7   :  { %603 = vperm.xlu1 %2263, %v601_v12  }
 0x561   :  { %v568_v18 = vpop.permute.xlu0 %567 }
 0x562   :  { %v570_v19 = vadd.f32 %v568_v18, %v560_v15 }
 0x564   :  { %2306 = vtanh.f32 %v570_v19  ;;  %v613_v13 = vrot.slane %v570_v19, 2 }
 0x565   :  { %v529_v22 = vpop.permute.xlu1 %528  ;;  %v527_v25 = vpop.permute.xlu0 %526 }
 0x566   :  { %v533_v27 = vadd.f32 %v529_v22, %v513_v21  ;;  %v532_v28 = vadd.f32 %v527_v25, %v512_v20 }
 0x568   :  { %2308 = vtanh.f32 %v533_v27  ;;  %v595_v29 = vrot.slane %v533_v27, 5  ;;  %v594_v32 = vrot.slane %v532_v28, 5 }
 0x569   :  { %2310 = vtanh.f32 %v532_v28 }
 0x56a   :  { %v596_v33 = vsel %vm584_vm10, %v594_v32, %v595_v29 }
 0x56e   :  { %v2307_v34 = vpop.eup %2306 }
 0x56f   :  { %573 = vrot.lane.b32.xlu0 %v2307_v34, %s2587_s27 }
 0x572   :  { %v2309_v35 = vpop.eup %2308 }
 0x573   :  { %v2311_v36 = vpop.eup %2310  ;;  %540 = vrot.lane.b32.xlu1 %v2309_v35, %s2587_s27 }
 0x574   :  { %538 = vrot.lane.b32.xlu0 %v2311_v36, %s2587_s27 }
 0x576   :  { %v2856_v39 = vpop.permute.xlu1 %603 }
 0x577   :  { %579 = vperm.xlu1 %2263, %v577_v37   ;;  %vm605_vm12 = vcmp.eq.s32.totalorder %v2856_v39, 1 }
 0x5e1   :  { %v574_v40 = vpop.permute.xlu0 %573 }
 0x5e2   :  { %v576_v41 = vmul.f32 %v2301_v63, %v574_v40 }
 0x5e4   :  { %v607_v42 = vrot.slane %v576_v41, 2 }
 0x5e5   :  { %v541_v43 = vpop.permute.xlu1 %540 }
 0x5e6   :  { %v545_v44 = vmul.f32 %v2305_v7, %v541_v43  ;;  %v539_v9 = vpop.permute.xlu0 %538  ;;  %608 = vrot.lane.b32.xlu0 %v607_v42, %s2585_s5 }
 0x5e7   :  { %v544_v5 = vmul.f32 %v2303_v6, %v539_v9 }
 0x5e8   :  { %v586_v45 = vrot.slane %v545_v44, 5 }
 0x5e9   :  { %v585_v46 = vrot.slane %v544_v5, 5 }
 0x5eb   :  { %v587_v47 = vsel %vm584_vm10, %v585_v46, %v586_v45 }
 0x5ec   :  { %588 = vrot.lane.b32.xlu0 %v587_v47, %s2588_s28 }
 0x5f0   :  { %614 = vrot.lane.b32.xlu0 %v613_v13, %s2589_s29 }
 0x5f6   :  { %v2867_v51 = vpop.permute.xlu1 %579 }
 0x5f7   :  { %vm581_vm13 = vcmp.eq.s32.totalorder %v2867_v51, 1 }
 0x658   :  { %v609_v49 = vpop.permute.xlu0 %608 }
 0x659   :  { %v611_v50 = vsel %vm605_vm12, %v609_v49, 0.0 }
 0x65a   :  { %619 = vrot.lane.b32.xlu1 %v611_v50, %s2585_s5  ;;  %630 = vst.msk [vmem:[#allocation3 + $0xa] sm:$0x1f] %vm410_vm6, %v611_v50 }
 0x65e   :  { %v589_v53 = vpop.permute.xlu0 %588  ;;  %597 = vrot.lane.b32.xlu1 %v596_v33, %s2590_s30 }
 0x65f   :  { %v628_v54 = vsel %vm581_vm13, %v589_v53, 0.0  ;;  %v591_v57 = vsel %vm581_vm13, %v589_v53, %v2821_v38 }
 0x660   :  { %629 = vst.msk [vmem:[#allocation2 + $0x5] sm:$0x1f] %vm410_vm6, %v628_v54 }
 0x662   :  { %v615_v55 = vpop.permute.xlu0 %614 }
 0x663   :  { %v617_v56 = vsel %vm605_vm12, %v615_v55, 0.0 }
 0x664   :  { %624 = vrot.lane.b32.xlu0 %v617_v56, %s2585_s5 }
 0x6cc   :  { %v620_v58 = vpop.permute.xlu1 %619 }
 0x6cd   :  { %v2881_v59 = vsel %vm399_vm8, %v591_v57, %v620_v58 }
 0x6ce   :  { %2110 = vmatmul.mubr.msk.f32.vlgmr.msra.gmra.mrb[6].mxu0 %vm111_vm1, %v2881_v59 }
 0x6cf   :  { %2131 = vmatprep.mubr.msk.f32.mxu0 %vm2582_vm0, %v2583_v1 }
 0x6d0   :  { %v598_v6 = vpop.permute.xlu1 %597 }
 0x6d1   :  { %v600_v8 = vsel %vm581_vm13, %v598_v6, %v2836_v48 }
 0x6d6   :  { %v625_v7 = vpop.permute.xlu0 %624 }
 0x6d7   :  { %v2895_v11 = vsel %vm399_vm8, %v600_v8, %v625_v7 }
 0x6d8   :  { %v755_v12 = vrot.slane %v2895_v11, 3  ;;  %v716_v36 = vrot.slane %v2895_v11, 6 }
 0x7a1   :  { %v700_v60 = vpop.f32.mrb[6].mxu0 }
 0x7a2   :  { %v701_v61 = vadd.f32 %v2761_v17, %v700_v60  ;;  %v2111_v62 = vpop.f32.mrb[7].mxu0 }
 0x7a4   :  { %v737_v63 = vrot.slane %v701_v61, 3  ;;  %v705_v3 = vrot.slane %v701_v61, 6 }
 0x7a6   :  { %v739_v2 = vadd.f32 %v737_v63, %v2770_v30  ;;  %v740_v38 = vadd.f32 %v737_v63, %v2767_v26  ;;  %v707_v4 = vadd.f32 %v705_v3, %v2767_v26 }
 0x7a8   :  { %2312 = vtanh.f32 %v739_v2  ;;  %v1981_v16 = vmul.f32 -1.442695, %v739_v2  ;;  %v1982_v18 = vmul.f32 -1.442695, %v740_v38  ;;  %v1980_v48 = vmul.f32 -1.442695, %v707_v4 }
 0x7a9   :  { %2314 = vtanh.f32 %v740_v38 }
 0x7aa   :  { %2316 = vtanh.f32 %v707_v4 }
 0x7ab   :  { %2318 = vpow2.f32 %v1981_v16 }
 0x7ac   :  { %2320 = vpow2.f32 %v1982_v18 }
 0x7ad   :  { %2322 = vpow2.f32 %v1980_v48 }
 0x7b2   :  { %v2313_v10 = vpop.eup %2312 }
 0x7b3   :  { %763 = vrot.lane.b32.xlu1 %v2313_v10, %s2584_s3  ;;  %v2315_v14 = vpop.eup %2314 }
 0x7b4   :  { %765 = vrot.lane.b32.xlu0 %v2315_v14, %s2584_s3  ;;  %v2317_v15 = vpop.eup %2316 }
 0x7b5   :  { %v2319_v19 = vpop.eup %2318 }
 0x7b6   :  { %v747_v20 = vadd.f32 1.0, %v2319_v19  ;;  %v2321_v21 = vpop.eup %2320 }
 0x7b7   :  { %756 = vrot.lane.b32.xlu1 %v755_v12, %s2591_s11  ;;  %v748_v22 = vadd.f32 1.0, %v2321_v21  ;;  %v2323_v25 = vpop.eup %2322 }
 0x7b8   :  { %722 = vrot.lane.b32.xlu0 %v2317_v15, %s2584_s3  ;;  %2324 = vrcp.f32 %v747_v20  ;;  %v711_v27 = vadd.f32 1.0, %v2323_v25 }
 0x7b9   :  { %2326 = vrcp.f32 %v748_v22 }
 0x7ba   :  { %2328 = vrcp.f32 %v711_v27 }
 0x7c2   :  { %v2325_v28 = vpop.eup %2324 }
 0x7c3   :  { %v2327_v33 = vpop.eup %2326 }
 0x7c4   :  { %v2329_v37 = vpop.eup %2328 }
 0x825   :  { %v764_v29 = vpop.permute.xlu1 %763 }
 0x826   :  { %v769_v32 = vmul.f32 %v2325_v28, %v764_v29  ;;  %v766_v34 = vpop.permute.xlu0 %765 }
 0x827   :  { %v770_v35 = vmul.f32 %v2327_v33, %v766_v34 }
 0x828   :  { %773 = vrot.lane.b32.xlu1 %v769_v32, %s2585_s5 }
 0x829   :  { %775 = vrot.lane.b32.xlu0 %v770_v35, %s2585_s5  ;;  %v757_v42 = vpop.permute.xlu1 %756 }
 0x82a   :  { %v723_v40 = vpop.permute.xlu0 %722  ;;  %v759_v43 = vmul.f32 %v2325_v28, %v757_v42  ;;  %v760_v5 = vmul.f32 %v2327_v33, %v757_v42 }
 0x82b   :  { %v725_v41 = vmul.f32 %v2329_v37, %v723_v40 }
 0x82c   :  { %717 = vrot.lane.b32.xlu1 %v716_v36, %s2585_s5 }
 0x82d   :  { %727 = vrot.lane.b32.xlu0 %v725_v41, %s2585_s5 }
 0x89a   :  { %v774_v44 = vpop.permute.xlu1 %773 }
 0x89b   :  { %v779_v9 = vadd.f32 %v774_v44, %v759_v43  ;;  %v776_v45 = vpop.permute.xlu0 %775 }
 0x89c   :  { %v780_v13 = vadd.f32 %v776_v45, %v760_v5 }
 0x89d   :  { %2330 = vtanh.f32 %v779_v9  ;;  %v816_v47 = vrot.slane %v779_v9, 5 }
 0x89e   :  { %v718_v46 = vpop.permute.xlu1 %717  ;;  %2332 = vtanh.f32 %v780_v13  ;;  %v817_v50 = vrot.slane %v780_v13, 5 }
 0x89f   :  { %v720_v49 = vmul.f32 %v2329_v37, %v718_v46  ;;  %v728_v53 = vpop.permute.xlu0 %727 }
 0x8a0   :  { %v818_v55 = vsel %vm584_vm10, %v816_v47, %v817_v50 }
 0x8a1   :  { %v730_v54 = vadd.f32 %v728_v53, %v720_v49 }
 0x8a3   :  { %2334 = vtanh.f32 %v730_v54  ;;  %v800_v14 = vrot.slane %v730_v54, 2 }
 0x8a7   :  { %v2331_v56 = vpop.eup %2330 }
 0x8a8   :  { %785 = vrot.lane.b32.xlu1 %v2331_v56, %s2587_s27  ;;  %v2333_v57 = vpop.eup %2332 }
 0x8a9   :  { %787 = vrot.lane.b32.xlu0 %v2333_v57, %s2587_s27 }
 0x8ad   :  { %v2335_v58 = vpop.eup %2334 }
 0x8ae   :  { %733 = vrot.lane.b32.xlu1 %v2335_v58, %s2587_s27 }
 0x91a   :  { %v786_v60 = vpop.permute.xlu1 %785 }
 0x91b   :  { %v791_v61 = vmul.f32 %v2325_v28, %v786_v60  ;;  %v788_v62 = vpop.permute.xlu0 %787 }
 0x91c   :  { %v792_v2 = vmul.f32 %v2327_v33, %v788_v62 }
 0x91d   :  { %v807_v63 = vrot.slane %v791_v61, 5 }
 0x91e   :  { %v808_v3 = vrot.slane %v792_v2, 5 }
 0x920   :  { %v734_v38 = vpop.permute.xlu1 %733  ;;  %v809_v6 = vsel %vm584_vm10, %v807_v63, %v808_v3 }
 0x921   :  { %v736_v4 = vmul.f32 %v2329_v37, %v734_v38  ;;  %810 = vrot.lane.b32.xlu0 %v809_v6, %s2585_s5 }
 0x923   :  { %v794_v7 = vrot.slane %v736_v4, 2 }
 0x925   :  { %795 = vrot.lane.b32.xlu1 %v794_v7, %s2588_s28 }
 0x929   :  { %819 = vrot.lane.b32.xlu1 %v818_v55, %s2589_s29 }
 0x993   :  { %v811_v8 = vpop.permute.xlu0 %810 }
 0x994   :  { %v813_v10 = vsel %vm581_vm13, %v811_v8, 0.0 }
 0x995   :  { %835 = vst.msk [vmem:[#allocation3 + $0x5] sm:$0x1f] %vm410_vm6, %v813_v10  ;;  %824 = vrot.lane.b32.xlu0 %v813_v10, %s2585_s5 }
 0x997   :  { %v796_v12 = vpop.permute.xlu1 %795 }
 0x998   :  { %v833_v15 = vsel %vm605_vm12, %v796_v12, 0.0  ;;  %v798_v48 = vsel %vm605_vm12, %v796_v12, %v2881_v59 }
 0x999   :  { %834 = vst.msk [vmem:[#allocation2 + $0xa] sm:$0x1f] %vm410_vm6, %v833_v15  ;;  %801 = vrot.lane.b32.xlu0 %v800_v14, %s2590_s30 }
 0x99b   :  { %v820_v16 = vpop.permute.xlu1 %819 }
 0x99c   :  { %v822_v18 = vsel %vm581_vm13, %v820_v16, 0.0 }
 0x99d   :  { %829 = vrot.lane.b32.xlu1 %v822_v18, %s2585_s5 }
 0xa07   :  { %v825_v19 = vpop.permute.xlu0 %824 }
 0xa08   :  { %v827_v20 = vsel %vm399_vm8, %v798_v48, %v825_v19  ;;  %v1011_v48 = vld [vmem:[#allocation10] sm:$0xff]  ;;  %v1012_v19 = vld [vmem:[#allocation10 + $0x8] sm:$0xff] }
 0xa09   :  { %2121 = vmatmul.mubr.msk.f32.vlgmr.msra.gmra.mrb[4].mxu1 %vm111_vm1, %v827_v20  ;;  %v1016_v20 = vld [vmem:[%s3238_s8] sm:$0xff] }
 0xa0a   :  { %2148 = vmatprep.mubr.msk.f32.mxu1 %vm2582_vm0, %v2583_v1 }
 0xa0b   :  { %v802_v21 = vpop.permute.xlu0 %801 }
 0xa0c   :  { %v804_v22 = vsel %vm605_vm12, %v802_v21, %v2895_v11 }
 0xa0f   :  { %v830_v25 = vpop.permute.xlu1 %829 }
 0xa10   :  { %v832_v27 = vsel %vm399_vm8, %v804_v22, %v830_v25  ;;  %v2215_v25 = vpack.c.bf16 %v1012_v19, %v1011_v48 }
 0xa11   :  { %975 = vrot.lane.b32.xlu1 %v832_v27, %s2591_s11 }
 0xa12   :  { %2216 = vmatpush3.bf16.msra.mxu0 %v2215_v25 }
 0xa13   :  { %2217 = vmatprep.subr.bf16.mxu0 %v2581_v0 }
 0xa83   :  { %v976_v5 = vpop.permute.xlu1 %975 }
 0xadc   :  { %v905_v28 = vpop.f32.mrb[4].mxu1 }
 0xadd   :  { %v906_v59 = vadd.f32 %v2761_v17, %v905_v28  ;;  %v2122_v29 = vpop.f32.mrb[5].mxu1  ;;  %v929_v17 = vrot.slane %v832_v27, 1  ;;  %v1017_v27 = vld [vmem:[%s3238_s8 + $0x8] sm:$0xff]  ;;  %v1013_v28 = vld [vmem:[#allocation10 + $0x10] sm:$0xff] }
 0xade   :  { %v2961_v29 = vpack.c.bf16 %v1017_v27, %v1016_v20 }
 0xadf   :  { %v910_v32 = vrot.slane %v906_v59, 1  ;;  %v967_v33 = vadd.f32 %v906_v59, %v2770_v30  ;;  %v1014_v59 = vld [vmem:[#allocation10 + $0x18] sm:$0xff] }
 0xae0   :  { %2222 = vmatpush3.bf16.msra.mxu1 %v2961_v29 }
 0xae1   :  { %v912_v34 = vadd.f32 %v910_v32, %v2767_v26  ;;  %v913_v35 = vadd.f32 %v910_v32, %v2772_v31  ;;  %2336 = vtanh.f32 %v967_v33  ;;  %v1986_v30 = vmul.f32 -1.442695, %v967_v33  ;;  %v1018_v32 = vld [vmem:[%s3238_s8 + $0x10] sm:$0xff]  ;;  %v1019_v33 = vld [vmem:[%s3238_s8 + $0x18] sm:$0xff]  ;;  %2223 = vmatprep.subr.bf16.mxu1 %v2581_v0 }
 0xae3   :  { %2338 = vtanh.f32 %v913_v35  ;;  %v1985_v40 = vmul.f32 -1.442695, %v913_v35  ;;  %v1984_v26 = vmul.f32 -1.442695, %v912_v34  ;;  %v2218_v35 = vpack.c.bf16 %v1014_v59, %v1013_v28 }
 0xae4   :  { %2340 = vtanh.f32 %v912_v34 }
 0xae5   :  { %2342 = vpow2.f32 %v1986_v30  ;;  %2219 = vmatpush3.bf16.msra.mxu0 %v2218_v35 }
 0xae6   :  { %2344 = vpow2.f32 %v1985_v40  ;;  %2226 = vmatprep.subr.bf16.mxu0 %v2581_v0 }
 0xae7   :  { %2346 = vpow2.f32 %v1984_v26  ;;  %v1026_v26 = vld [vmem:[#allocation3 + $0x10] sm:$0xf] }
 0xaeb   :  { %v2337_v11 = vpop.eup %2336 }
 0xaec   :  { %980 = vrot.lane.b32.xlu0 %v2337_v11, %s2584_s3  ;;  %v2972_v11 = vpack.c.bf16 %v1019_v33, %v1018_v32 }
 0xaed   :  { %v2339_v36 = vpop.eup %2338 }
 0xaee   :  { %v2341_v37 = vpop.eup %2340  ;;  %939 = vrot.lane.b32.xlu1 %v2339_v36, %s2584_s3  ;;  %v1025_v36 = vld [vmem:[#allocation3 + $0x8] sm:$0xff]  ;;  %2225 = vmatpush3.bf16.msra.mxu1 %v2972_v11 }
 0xaef   :  { %v2343_v31 = vpop.eup %2342  ;;  %2232 = vmatprep.subr.bf16.mxu1 %v2581_v0 }
 0xaf0   :  { %937 = vrot.lane.b32.xlu0 %v2341_v37, %s2584_s3  ;;  %v2345_v41 = vpop.eup %2344  ;;  %v971_v42 = vadd.f32 1.0, %v2343_v31  ;;  %v1021_v31 = vld [vmem:[#allocation2] sm:$0xff] }
 0xaf1   :  { %v2347_v43 = vpop.eup %2346  ;;  %v921_v44 = vadd.f32 1.0, %v2345_v41  ;;  %2149 = vmatmul.mubr.f32.vlgmr.msra.gmra.mrb[6].mxu1 %v2583_v1 }
 0xaf2   :  { %930 = vrot.lane.b32.xlu1 %v929_v17, %s2585_s5  ;;  %v920_v9 = vadd.f32 1.0, %v2347_v43  ;;  %2348 = vrcp.f32 %v971_v42  ;;  %2234 = vmatpush3.bf16.msra.mxu1 %v2961_v29 }
 0xaf3   :  { %2350 = vrcp.f32 %v921_v44  ;;  %2170 = vmatprep.mubr.msk.f32.mxu1 %vm2582_vm0, %v2583_v1  ;;  %2235 = vmatprep.subr.bf16.mxu1 %v2581_v0 }
 0xaf4   :  { %2352 = vrcp.f32 %v920_v9 }
 0xaf6   :  { %2237 = vmatpush3.bf16.msra.mxu1 %v2972_v11 }
 0xafc   :  { %v2349_v45 = vpop.eup %2348 }
 0xafd   :  { %v2351_v13 = vpop.eup %2350  ;;  %v978_v57 = vmul.f32 %v2349_v45, %v976_v5 }
 0xafe   :  { %v2353_v50 = vpop.eup %2352 }
 0xb5e   :  { %v981_v46 = vpop.permute.xlu0 %980 }
 0xb5f   :  { %v983_v47 = vmul.f32 %v2349_v45, %v981_v46 }
 0xb60   :  { %v940_v49 = vpop.permute.xlu1 %939 }
 0xb61   :  { %985 = vrot.lane.b32.xlu0 %v983_v47, %s2585_s5  ;;  %v944_v53 = vmul.f32 %v2351_v13, %v940_v49  ;;  %v1987_v49 = vld [vmem:[%s3237_s7] ss:$0 sm:$0xff] }
 0xb62   :  { %v938_v54 = vpop.permute.xlu0 %937 }
 0xb63   :  { %v943_v55 = vmul.f32 %v2353_v50, %v938_v54  ;;  %949 = vrot.lane.b32.xlu1 %v944_v53, %s2585_s5 }
 0xb64   :  { %v931_v56 = vpop.permute.xlu1 %930 }
 0xb65   :  { %947 = vrot.lane.b32.xlu0 %v943_v55, %s2585_s5  ;;  %v934_v61 = vmul.f32 %v2351_v13, %v931_v56  ;;  %v933_v62 = vmul.f32 %v2353_v50, %v931_v56 }
 0xbc4   :  { %v1209_v47 = vpop.f32.mrb[6].mxu1 }
 0xbd3   :  { %v986_v58 = vpop.permute.xlu0 %985 }
 0xbd4   :  { %v988_v60 = vadd.f32 %v986_v58, %v978_v57 }
 0xbd5   :  { %v950_v63 = vpop.permute.xlu1 %949 }
 0xbd6   :  { %2354 = vtanh.f32 %v988_v60  ;;  %v954_v2 = vadd.f32 %v950_v63, %v934_v61 }
 0xbd7   :  { %v948_v3 = vpop.permute.xlu0 %947 }
 0xbd8   :  { %v953_v38 = vadd.f32 %v948_v3, %v933_v62  ;;  %2356 = vtanh.f32 %v954_v2 }
 0xbda   :  { %2358 = vtanh.f32 %v953_v38 }
 0xbe0   :  { %v2355_v4 = vpop.eup %2354 }
 0xbe1   :  { %991 = vrot.lane.b32.xlu0 %v2355_v4, %s2587_s27 }
 0xbe2   :  { %v2357_v6 = vpop.eup %2356 }
 0xbe4   :  { %v2359_v7 = vpop.eup %2358 }
 0xbe5   :  { %961 = vrot.lane.b32.xlu0 %v2357_v6, %s2587_s27  ;;  %959 = vrot.lane.b32.xlu1 %v2359_v7, %s2587_s27 }
 0xc53   :  { %v992_v8 = vpop.permute.xlu0 %991 }
 0xc54   :  { %v994_v10 = vmul.f32 %v2349_v45, %v992_v8 }
 0xc56   :  { %v995_v12 = vsel %vm364_vm5, %v994_v10, 0.0 }
 0xc57   :  { %v960_v14 = vpop.permute.xlu1 %959  ;;  %1007 = vrot.lane.b32.xlu1 %v995_v12, %s2585_s5  ;;  %v962_v15 = vpop.permute.xlu0 %961 }
 0xc58   :  { %v965_v16 = vmul.f32 %v2353_v50, %v960_v14  ;;  %v966_v18 = vmul.f32 %v2351_v13, %v962_v15  ;;  %v2150_v13 = vpop.f32.mrb[7].mxu1  ;;  %v3014_v50 = vld [vmem:[%s3239_s9] ss:$0 sm:$0xff] }
 0xc59   :  { %v1210_v55 = vadd.f32 %v3014_v50, %v1209_v47 }
 0xc5a   :  { %v998_v21 = vrot.slane %v965_v16, 7  ;;  %v999_v22 = vrot.slane %v966_v18, 7 }
 0xc5b   :  { %v1239_v57 = vrot.slane %v1210_v55, 1 }
 0xc5c   :  { %v1000_v34 = vsel %vm374_vm2, %v998_v21, %v999_v22 }
 0xc5d   :  { %1001 = vrot.lane.b32.xlu0 %v1000_v34, %s2588_s28 }
 0xc61   :  { %1032 = vrot.lane.b32.xlu0 %v1025_v36, %s2585_s5 }
 0xcc9   :  { %v1008_v37 = vpop.permute.xlu1 %1007 }
 0xcca   :  { %1010 = vst.msk [vmem:[#allocation3] sm:$0x1f] %vm410_vm6, %v1008_v37 }
 0xccf   :  { %v1002_v17 = vpop.permute.xlu0 %1001 }
 0xcd0   :  { %v1004_v30 = vsel %vm371_vm7, %v1002_v17, 0.0 }
 0xcd1   :  { %1005 = vst.msk [vmem:[#allocation2 + $0xf] sm:$0x1f] %vm410_vm6, %v1004_v30  ;;  %v1024_v40 = vld [vmem:[#allocation3] sm:$0xff] }
 0xcd2   :  { %1030 = vrot.lane.b32.xlu1 %v1024_v40, %s2585_s5 }
 0xcd3   :  { %v1033_v44 = vpop.permute.xlu0 %1032 }
 0xcd6   :  { %1034 = vrot.lane.b32.xlu1 %v1026_v26, %s2585_s5 }
 0xcd8   :  { %v1022_v43 = vld [vmem:[#allocation2 + $0x8] sm:$0xff]  ;;  %v1023_v45 = vld [vmem:[#allocation2 + $0x10] sm:$0xf] }
 0xcd9   :  { %v1040_v9 = vsel %vm399_vm8, %v1022_v43, %v1033_v44 }
 0xd44   :  { %v1031_v41 = vpop.permute.xlu1 %1030 }
 0xd45   :  { %v1039_v42 = vsel %vm399_vm8, %v1021_v31, %v1031_v41 }
 0xd46   :  { %2132 = vmatmul.mubr.msk.f32.vlgmr.msra.gmra.mrb[8].mxu0 %vm111_vm1, %v1039_v42 }
 0xd47   :  { %2134 = vmatprep.mubr.msk.f32.mxu0 %vm2582_vm0, %v2583_v1  ;;  %2228 = vmatpush3.bf16.msra.mxu0 %v2961_v29 }
 0xd48   :  { %2229 = vmatprep.subr.bf16.mxu0 %v2581_v0  ;;  %v1035_v5 = vpop.permute.xlu1 %1034 }
 0xd49   :  { %v1041_v46 = vsel %vm399_vm8, %v1023_v45, %v1035_v5 }
 0xd4a   :  { %2135 = vmatmul.mubr.msk.f32.gmra.mrb[10].mxu0 %vm111_vm1, %v1040_v9 }
 0xd4b   :  { %2137 = vmatprep.mubr.msk.f32.mxu0 %vm2582_vm0, %v2583_v1  ;;  %2231 = vmatpush3.bf16.msra.mxu0 %v2972_v11 }
 0xd4c   :  { %2238 = vmatprep.subr.bf16.mxu0 %v2581_v0 }
 0xd4e   :  { %2138 = vmatmul.mubr.msk.f32.gmra.mrb[12].mxu0 %vm111_vm1, %v1041_v46 }
 0xd4f   :  { %2159 = vmatprep.mubr.msk.f32.mxu0 %vm2582_vm0, %v2583_v1 }
 0xe19   :  { %v1123_v53 = vpop.f32.mrb[8].mxu0 }
 0xe1a   :  { %v3016_v54 = vadd.f32 %v1987_v49, %v1123_v53  ;;  %v2133_v56 = vpop.f32.mrb[9].mxu0 }
 0xe1c   :  { %v1213_v16 = vadd.f32 %v1210_v55, %v3016_v54 }
 0xe1d   :  { %v1128_v58 = vpop.f32.mrb[10].mxu0 }
 0xe1e   :  { %v3019_v60 = vadd.f32 %v1987_v49, %v1128_v58  ;;  %v2136_v61 = vpop.f32.mrb[11].mxu0  ;;  %v1992_v27 = vmul.f32 -1.442695, %v1213_v16 }
 0xe20   :  { %v1241_v62 = vadd.f32 %v1239_v57, %v3019_v60 }
 0xe21   :  { %v1133_v63 = vpop.f32.mrb[12].mxu0 }
 0xe22   :  { %2360 = vtanh.f32 %v1241_v62  ;;  %v3022_v2 = vadd.f32 %v1987_v49, %v1133_v63  ;;  %v2139_v3 = vpop.f32.mrb[13].mxu0  ;;  %v1993_v7 = vmul.f32 -1.442695, %v1241_v62 }
 0xe24   :  { %v1242_v38 = vadd.f32 %v1239_v57, %v3022_v2 }
 0xe26   :  { %2362 = vtanh.f32 %v1242_v38  ;;  %v1994_v8 = vmul.f32 -1.442695, %v1242_v38 }
 0xe27   :  { %2364 = vpow2.f32 %v1993_v7 }
 0xe28   :  { %2366 = vpow2.f32 %v1994_v8 }
 0xe2c   :  { %v2361_v4 = vpop.eup %2360 }
 0xe2d   :  { %1261 = vrot.lane.b32.xlu0 %v2361_v4, %s2584_s3 }
 0xe30   :  { %v2363_v6 = vpop.eup %2362 }
 0xe31   :  { %1263 = vrot.lane.b32.xlu1 %v2363_v6, %s2584_s3  ;;  %v2365_v10 = vpop.eup %2364 }
 0xe32   :  { %v1249_v12 = vadd.f32 1.0, %v2365_v10  ;;  %v2367_v14 = vpop.eup %2366 }
 0xe33   :  { %v1250_v15 = vadd.f32 1.0, %v2367_v14 }
 0xe34   :  { %2368 = vrcp.f32 %v1249_v12 }
 0xe35   :  { %2370 = vrcp.f32 %v1250_v15 }
 0xe36   :  { %2372 = vtanh.f32 %v1213_v16 }
 0xe37   :  { %2374 = vpow2.f32 %v1992_v27 }
 0xe3e   :  { %v2369_v18 = vpop.eup %2368 }
 0xe3f   :  { %v2371_v20 = vpop.eup %2370  ;;  %v1257_v32 = vmul.f32 0.0, %v2369_v18 }
 0xe40   :  { %v2373_v25 = vpop.eup %2372  ;;  %v1258_v35 = vmul.f32 0.0, %v2371_v20 }
 0xe41   :  { %v2375_v28 = vpop.eup %2374 }
 0xe42   :  { %v1217_v59 = vadd.f32 1.0, %v2375_v28 }
 0xe44   :  { %2376 = vrcp.f32 %v1217_v59 }
 0xe4e   :  { %v2377_v36 = vpop.eup %2376 }
 0xe4f   :  { %v1221_v44 = vmul.f32 0.0, %v2377_v36 }
 0xe9f   :  { %v1262_v48 = vpop.permute.xlu0 %1261 }
 0xea0   :  { %v1267_v19 = vmul.f32 %v2369_v18, %v1262_v48 }
 0xea2   :  { %1271 = vrot.lane.b32.xlu0 %v1267_v19, %s2585_s5 }
 0xea3   :  { %v1264_v21 = vpop.permute.xlu1 %1263 }
 0xea4   :  { %v1268_v22 = vmul.f32 %v2371_v20, %v1264_v21 }
 0xea6   :  { %1223 = vrot.lane.b32.xlu0 %v2373_v25, %s2584_s3  ;;  %1273 = vrot.lane.b32.xlu1 %v1268_v22, %s2585_s5 }
 0xf14   :  { %v1272_v33 = vpop.permute.xlu0 %1271 }
 0xf15   :  { %v1277_v34 = vadd.f32 %v1272_v33, %v1257_v32 }
 0xf17   :  { %2378 = vtanh.f32 %v1277_v34  ;;  %v1304_v26 = vrot.slane %v1277_v34, 7 }
 0xf18   :  { %v1224_v37 = vpop.permute.xlu0 %1223  ;;  %v1274_v17 = vpop.permute.xlu1 %1273 }
 0xf19   :  { %v1226_v30 = vmul.f32 %v2377_v36, %v1224_v37  ;;  %v1278_v40 = vadd.f32 %v1274_v17, %v1258_v35 }
 0xf1b   :  { %2380 = vtanh.f32 %v1278_v40  ;;  %v1305_v31 = vrot.slane %v1278_v40, 7  ;;  %1228 = vrot.lane.b32.xlu1 %v1226_v30, %s2585_s5 }
 0xf1d   :  { %v1306_v41 = vsel %vm374_vm2, %v1304_v26, %v1305_v31 }
 0xf21   :  { %v2379_v42 = vpop.eup %2378 }
 0xf22   :  { %1283 = vrot.lane.b32.xlu0 %v2379_v42, %s2587_s27 }
 0xf25   :  { %v2381_v43 = vpop.eup %2380 }
 0xf26   :  { %1285 = vrot.lane.b32.xlu1 %v2381_v43, %s2587_s27 }
 0xf8d   :  { %v1229_v9 = vpop.permute.xlu1 %1228 }
 0xf8e   :  { %v1231_v5 = vadd.f32 %v1229_v9, %v1221_v44 }
 0xf90   :  { %2382 = vtanh.f32 %v1231_v5  ;;  %v1292_v3 = vsel %vm364_vm5, %v1231_v5, 0.0 }
 0xf94   :  { %v1284_v45 = vpop.permute.xlu0 %1283 }
 0xf95   :  { %v1289_v46 = vmul.f32 %v2369_v18, %v1284_v45 }
 0xf97   :  { %v1295_v53 = vrot.slane %v1289_v46, 7 }
 0xf98   :  { %v1286_v47 = vpop.permute.xlu1 %1285 }
 0xf99   :  { %v1290_v13 = vmul.f32 %v2371_v20, %v1286_v47 }
 0xf9a   :  { %v2383_v49 = vpop.eup %2382 }
 0xf9b   :  { %v1296_v55 = vrot.slane %v1290_v13, 7  ;;  %1234 = vrot.lane.b32.xlu0 %v2383_v49, %s2587_s27 }
 0xf9d   :  { %v1297_v56 = vsel %vm374_vm2, %v1295_v53, %v1296_v55 }
 0xf9e   :  { %1298 = vrot.lane.b32.xlu1 %v1297_v56, %s2585_s5 }
0x100d   :  { %v1235_v57 = vpop.permute.xlu0 %1234 }
0x100e   :  { %v1237_v58 = vmul.f32 %v2377_v36, %v1235_v57 }
0x1010   :  { %v1299_v61 = vpop.permute.xlu1 %1298  ;;  %v3040_v62 = vsel %vm364_vm5, %v1237_v58, 0.0 }
0x1011   :  { %v3044_v63 = vsel %vm371_vm7, %v1299_v61, 0.0  ;;  %1312 = vrot.lane.b32.xlu0 %v3040_v62, %s2588_s28 }
0x1012   :  { %1316 = vrot.lane.b32.xlu1 %v3044_v63, %s2585_s5 }
0x1015   :  { %1307 = vrot.lane.b32.xlu0 %v1306_v41, %s2589_s29 }
0x1016   :  { %1321 = vrot.lane.b32.xlu1 %v1292_v3, %s2590_s30 }
0x1083   :  { %v1313_v38 = vpop.permute.xlu0 %1312 }
0x1084   :  { %v1317_v4 = vpop.permute.xlu1 %1316 }
0x1085   :  { %v3055_v6 = vsel %vm399_vm8, %v1313_v38, %v1317_v4 }
0x1086   :  { %2160 = vmatmul.mubr.msk.f32.vlgmr.msra.gmra.mrb[14].mxu0 %vm111_vm1, %v3055_v6 }
0x1087   :  { %v1308_v7 = vpop.permute.xlu0 %1307  ;;  %2240 = vmatpush3.bf16.msra.mxu0 %v2961_v29  ;;  %2181 = vmatprep.mubr.msk.f32.mxu0 %vm2582_vm0, %v2583_v1 }
0x1088   :  { %v1310_v8 = vsel %vm371_vm7, %v1308_v7, 0.0  ;;  %2241 = vmatprep.subr.bf16.mxu0 %v2581_v0  ;;  %v1322_v0 = vpop.permute.xlu1 %1321 }
0x1089   :  { %1325 = vrot.lane.b32.xlu0 %v1310_v8, %s2585_s5 }
0x108b   :  { %2243 = vmatpush3.bf16.msra.mxu0 %v2972_v11 }
0x10fb   :  { %v1326_v48 = vpop.permute.xlu0 %1325 }
0x10fc   :  { %v3072_v11 = vsel %vm399_vm8, %v1322_v0, %v1326_v48 }
0x10fd   :  { %v1485_v20 = vrot.slane %v3072_v11, 6  ;;  %v1437_v22 = vrot.slane %v3072_v11, 3 }
0x1159   :  { %v1413_v10 = vpop.f32.mrb[14].mxu0 }
0x115a   :  { %v1414_v12 = vadd.f32 %v3014_v50, %v1413_v10  ;;  %v2161_v14 = vpop.f32.mrb[15].mxu0 }
0x115c   :  { %v1418_v15 = vrot.slane %v1414_v12, 3  ;;  %v1475_v16 = vrot.slane %v1414_v12, 6 }
0x115e   :  { %v1420_v29 = vadd.f32 %v1418_v15, %v3016_v54  ;;  %v1477_v1 = vadd.f32 %v1475_v16, %v3019_v60  ;;  %v1421_v18 = vadd.f32 %v1418_v15, %v3019_v60 }
0x1160   :  { %2384 = vtanh.f32 %v1420_v29  ;;  %v1999_v27 = vmul.f32 -1.442695, %v1477_v1  ;;  %v1997_v28 = vmul.f32 -1.442695, %v1420_v29  ;;  %v1998_v59 = vmul.f32 -1.442695, %v1421_v18 }
0x1161   :  { %2386 = vtanh.f32 %v1477_v1 }
0x1162   :  { %2388 = vtanh.f32 %v1421_v18 }
0x1163   :  { %2390 = vpow2.f32 %v1999_v27 }
0x1164   :  { %2392 = vpow2.f32 %v1997_v28 }
0x1165   :  { %2394 = vpow2.f32 %v1998_v59 }
0x116a   :  { %v2385_v19 = vpop.eup %2384 }
0x116b   :  { %1445 = vrot.lane.b32.xlu0 %v2385_v19, %s2584_s3  ;;  %v2387_v21 = vpop.eup %2386 }
0x116c   :  { %1491 = vrot.lane.b32.xlu1 %v2387_v21, %s2584_s3  ;;  %v2389_v25 = vpop.eup %2388 }
0x116d   :  { %v2391_v32 = vpop.eup %2390 }
0x116e   :  { %v2393_v33 = vpop.eup %2392  ;;  %v1481_v34 = vadd.f32 1.0, %v2391_v32 }
0x116f   :  { %1486 = vrot.lane.b32.xlu0 %v1485_v20, %s2591_s11  ;;  %v2395_v35 = vpop.eup %2394  ;;  %v1428_v36 = vadd.f32 1.0, %v2393_v33 }
0x1170   :  { %1447 = vrot.lane.b32.xlu1 %v2389_v25, %s2584_s3  ;;  %v1429_v37 = vadd.f32 1.0, %v2395_v35  ;;  %2396 = vrcp.f32 %v1481_v34 }
0x1171   :  { %2398 = vrcp.f32 %v1428_v36 }
0x1172   :  { %2400 = vrcp.f32 %v1429_v37 }
0x1173   :  { %1438 = vrot.lane.b32.xlu0 %v1437_v22, %s2585_s5 }
0x117a   :  { %v2397_v17 = vpop.eup %2396 }
0x117b   :  { %v2399_v31 = vpop.eup %2398 }
0x117c   :  { %v2401_v41 = vpop.eup %2400 }
0x11dd   :  { %v1446_v26 = vpop.permute.xlu0 %1445 }
0x11de   :  { %v1492_v30 = vpop.permute.xlu1 %1491  ;;  %v1451_v43 = vmul.f32 %v2399_v31, %v1446_v26 }
0x11df   :  { %v1494_v40 = vmul.f32 %v2397_v17, %v1492_v30 }
0x11e1   :  { %1496 = vrot.lane.b32.xlu1 %v1494_v40, %s2585_s5  ;;  %v1487_v9 = vpop.permute.xlu0 %1486 }
0x11e2   :  { %v1448_v42 = vpop.permute.xlu1 %1447  ;;  %v1489_v5 = vmul.f32 %v2397_v17, %v1487_v9 }
0x11e3   :  { %v1452_v44 = vmul.f32 %v2401_v41, %v1448_v42 }
0x11e5   :  { %1457 = vrot.lane.b32.xlu0 %v1452_v44, %s2585_s5  ;;  %1455 = vrot.lane.b32.xlu1 %v1451_v43, %s2585_s5  ;;  %v1439_v45 = vpop.permute.xlu0 %1438 }
0x11e6   :  { %v1441_v13 = vmul.f32 %v2399_v31, %v1439_v45  ;;  %v1442_v49 = vmul.f32 %v2401_v41, %v1439_v45 }
0x1253   :  { %v1497_v46 = vpop.permute.xlu1 %1496 }
0x1254   :  { %v1499_v47 = vadd.f32 %v1497_v46, %v1489_v5 }
0x1256   :  { %2402 = vtanh.f32 %v1499_v47  ;;  %v1531_v0 = vrot.slane %v1499_v47, 2 }
0x1257   :  { %v1458_v53 = vpop.permute.xlu0 %1457  ;;  %v1456_v55 = vpop.permute.xlu1 %1455 }
0x1258   :  { %v1462_v56 = vadd.f32 %v1458_v53, %v1442_v49  ;;  %v1461_v57 = vadd.f32 %v1456_v55, %v1441_v13 }
0x125a   :  { %2404 = vtanh.f32 %v1462_v56  ;;  %v1518_v58 = vrot.slane %v1462_v56, 5  ;;  %v1517_v61 = vrot.slane %v1461_v57, 5 }
0x125b   :  { %2406 = vtanh.f32 %v1461_v57 }
0x125c   :  { %v1519_v3 = vsel %vm584_vm10, %v1517_v61, %v1518_v58 }
0x1260   :  { %v2403_v38 = vpop.eup %2402 }
0x1261   :  { %1502 = vrot.lane.b32.xlu1 %v2403_v38, %s2587_s27 }
0x1264   :  { %v2405_v4 = vpop.eup %2404 }
0x1265   :  { %v2407_v7 = vpop.eup %2406  ;;  %1469 = vrot.lane.b32.xlu1 %v2405_v4, %s2587_s27 }
0x1266   :  { %1467 = vrot.lane.b32.xlu0 %v2407_v7, %s2587_s27 }
0x12d3   :  { %v1503_v8 = vpop.permute.xlu1 %1502 }
0x12d4   :  { %v1505_v10 = vmul.f32 %v2397_v17, %v1503_v8 }
0x12d6   :  { %v1525_v12 = vrot.slane %v1505_v10, 2 }
0x12d7   :  { %v1470_v14 = vpop.permute.xlu1 %1469 }
0x12d8   :  { %v1474_v15 = vmul.f32 %v2401_v41, %v1470_v14  ;;  %v1468_v16 = vpop.permute.xlu0 %1467  ;;  %1526 = vrot.lane.b32.xlu0 %v1525_v12, %s2585_s5 }
0x12d9   :  { %v1473_v29 = vmul.f32 %v2399_v31, %v1468_v16 }
0x12da   :  { %v1509_v1 = vrot.slane %v1474_v15, 5 }
0x12db   :  { %v1508_v18 = vrot.slane %v1473_v29, 5 }
0x12dd   :  { %v1510_v48 = vsel %vm584_vm10, %v1508_v18, %v1509_v1 }
0x12de   :  { %1511 = vrot.lane.b32.xlu1 %v1510_v48, %s2588_s28 }
0x12e2   :  { %1532 = vrot.lane.b32.xlu1 %v1531_v0, %s2589_s29 }
0x134a   :  { %v1527_v19 = vpop.permute.xlu0 %1526 }
0x134b   :  { %v3094_v20 = vsel %vm605_vm12, %v1527_v19, 0.0 }
0x134c   :  { %1537 = vrot.lane.b32.xlu0 %v3094_v20, %s2585_s5 }
0x1350   :  { %v1512_v21 = vpop.permute.xlu1 %1511  ;;  %1520 = vrot.lane.b32.xlu0 %v1519_v3, %s2590_s30 }
0x1351   :  { %v3105_v27 = vsel %vm581_vm13, %v1512_v21, %v3055_v6 }
0x1354   :  { %v1533_v22 = vpop.permute.xlu1 %1532 }
0x1355   :  { %v1535_v25 = vsel %vm605_vm12, %v1533_v22, 0.0 }
0x1356   :  { %1542 = vrot.lane.b32.xlu1 %v1535_v25, %s2585_s5 }
0x13be   :  { %v1538_v28 = vpop.permute.xlu0 %1537 }
0x13bf   :  { %v3109_v59 = vsel %vm399_vm8, %v3105_v27, %v1538_v28 }
0x13c0   :  { %2171 = vmatmul.mubr.msk.f32.vlgmr.msra.gmra.mrb[8].mxu1 %vm111_vm1, %v3109_v59 }
0x13c2   :  { %v1521_v30 = vpop.permute.xlu0 %1520 }
0x13c3   :  { %v1523_v26 = vsel %vm581_vm13, %v1521_v30, %v3072_v11 }
0x13c8   :  { %v1543_v40 = vpop.permute.xlu1 %1542 }
0x13c9   :  { %v3121_v41 = vsel %vm399_vm8, %v1523_v26, %v1543_v40 }
0x13ca   :  { %v1688_v42 = vrot.slane %v3121_v41, 3  ;;  %v1649_v3 = vrot.slane %v3121_v41, 6 }
0x1493   :  { %v1633_v32 = vpop.f32.mrb[8].mxu1 }
0x1494   :  { %v1634_v33 = vadd.f32 %v3014_v50, %v1633_v32  ;;  %v2172_v34 = vpop.f32.mrb[9].mxu1 }
0x1496   :  { %v1670_v35 = vrot.slane %v1634_v33, 3  ;;  %v1638_v37 = vrot.slane %v1634_v33, 6 }
0x1498   :  { %v1672_v36 = vadd.f32 %v1670_v35, %v3016_v54  ;;  %v1673_v17 = vadd.f32 %v1670_v35, %v3019_v60  ;;  %v1640_v6 = vadd.f32 %v1638_v37, %v3019_v60 }
0x149a   :  { %2408 = vtanh.f32 %v1672_v36  ;;  %v2002_v9 = vmul.f32 -1.442695, %v1672_v36  ;;  %v2003_v5 = vmul.f32 -1.442695, %v1673_v17  ;;  %v2001_v11 = vmul.f32 -1.442695, %v1640_v6 }
0x149b   :  { %2410 = vtanh.f32 %v1673_v17 }
0x149c   :  { %2412 = vtanh.f32 %v1640_v6 }
0x149d   :  { %2414 = vpow2.f32 %v2002_v9 }
0x149e   :  { %2416 = vpow2.f32 %v2003_v5 }
0x149f   :  { %2418 = vpow2.f32 %v2001_v11 }
0x14a4   :  { %v2409_v31 = vpop.eup %2408 }
0x14a5   :  { %1696 = vrot.lane.b32.xlu0 %v2409_v31, %s2584_s3  ;;  %v2411_v43 = vpop.eup %2410 }
0x14a6   :  { %1698 = vrot.lane.b32.xlu1 %v2411_v43, %s2584_s3  ;;  %v2413_v44 = vpop.eup %2412 }
0x14a7   :  { %v2415_v45 = vpop.eup %2414 }
0x14a8   :  { %v1680_v46 = vadd.f32 1.0, %v2415_v45  ;;  %v2417_v47 = vpop.eup %2416 }
0x14a9   :  { %1689 = vrot.lane.b32.xlu0 %v1688_v42, %s2591_s11  ;;  %v1681_v13 = vadd.f32 1.0, %v2417_v47  ;;  %v2419_v49 = vpop.eup %2418 }
0x14aa   :  { %1655 = vrot.lane.b32.xlu1 %v2413_v44, %s2584_s3  ;;  %2420 = vrcp.f32 %v1680_v46  ;;  %v1644_v53 = vadd.f32 1.0, %v2419_v49 }
0x14ab   :  { %2422 = vrcp.f32 %v1681_v13 }
0x14ac   :  { %2424 = vrcp.f32 %v1644_v53 }
0x14b4   :  { %v2421_v55 = vpop.eup %2420 }
0x14b5   :  { %v2423_v58 = vpop.eup %2422 }
0x14b6   :  { %v2425_v4 = vpop.eup %2424 }
0x1517   :  { %v1697_v56 = vpop.permute.xlu0 %1696 }
0x1518   :  { %v1702_v57 = vmul.f32 %v2421_v55, %v1697_v56  ;;  %v1699_v61 = vpop.permute.xlu1 %1698 }
0x1519   :  { %v1703_v38 = vmul.f32 %v2423_v58, %v1699_v61 }
0x151a   :  { %1706 = vrot.lane.b32.xlu0 %v1702_v57, %s2585_s5 }
0x151b   :  { %1708 = vrot.lane.b32.xlu1 %v1703_v38, %s2585_s5  ;;  %v1690_v10 = vpop.permute.xlu0 %1689 }
0x151c   :  { %v1656_v7 = vpop.permute.xlu1 %1655  ;;  %v1692_v12 = vmul.f32 %v2421_v55, %v1690_v10  ;;  %v1693_v16 = vmul.f32 %v2423_v58, %v1690_v10 }
0x151d   :  { %v1658_v8 = vmul.f32 %v2425_v4, %v1656_v7 }
0x151e   :  { %1650 = vrot.lane.b32.xlu0 %v1649_v3, %s2585_s5 }
0x151f   :  { %1660 = vrot.lane.b32.xlu1 %v1658_v8, %s2585_s5 }
0x158c   :  { %v1707_v14 = vpop.permute.xlu0 %1706 }
0x158d   :  { %v1712_v15 = vadd.f32 %v1707_v14, %v1692_v12  ;;  %v1709_v29 = vpop.permute.xlu1 %1708 }
0x158e   :  { %v1713_v18 = vadd.f32 %v1709_v29, %v1693_v16 }
0x158f   :  { %2426 = vtanh.f32 %v1712_v15  ;;  %v1749_v48 = vrot.slane %v1712_v15, 5 }
0x1590   :  { %v1651_v1 = vpop.permute.xlu0 %1650  ;;  %2428 = vtanh.f32 %v1713_v18  ;;  %v1750_v19 = vrot.slane %v1713_v18, 5 }
0x1591   :  { %v1653_v0 = vmul.f32 %v2425_v4, %v1651_v1  ;;  %v1661_v21 = vpop.permute.xlu1 %1660 }
0x1592   :  { %v1751_v25 = vsel %vm584_vm10, %v1749_v48, %v1750_v19  ;;  %v2456_v48 = vld [vmem:[%s3231_s1] sm:$0x1f]  ;;  %s2592_s1 = smov [#allocation12]  }
0x1593   :  { %v1663_v22 = vadd.f32 %v1661_v21, %v1653_v0  ;;  %v1995_v0 = vadd.s32 4294967295, %v2456_v48  ;;  %s1956_s4 = sshll.u32 %s2592_s1, 4  ;;  %s1957_s4 = int_to_ptr.vmem [resolvable:$true] %s1956_s4 }
0x1594   :  { %s2545_s20 = scalar_lea.vmem %s1957_s4, 128  ;;  %p2550_p5 = scmp.lt.s32.totalorder %s1957_s4, %s1957_s4 }
0x1595   :  { %2430 = vtanh.f32 %v1663_v22  ;;  %v1733_v9 = vrot.slane %v1663_v22, 2  ;;  %vm1337_vm14 = vcmp.eq.s32.totalorder %v1995_v0, 3  ;;  %vm1557_vm15 = vcmp.eq.s32.totalorder %v1995_v0, 2  ;;  %p2546_p4 = scmp.ne.s32.totalorder %s1957_s4, %s2545_s20  ;;  %p2551_p6 = scmp.lt.s32.totalorder %s2545_s20, %s2545_s20 }
0x1596   :  { %vm1546_vm0 = vcmp.eq.s32.totalorder %v1995_v0, 1 }
0x1597   :  { %p2552_p7 = por %p2551_p6, %p2550_p5 }
0x1599   :  { %v2427_v28 = vpop.eup %2426  ;;  %p2553_p8 = pnand %p2552_p7, %p2546_p4 }
0x159a   :  { %1718 = vrot.lane.b32.xlu0 %v2427_v28, %s2587_s27  ;;  %v2429_v32 = vpop.eup %2428  ;;  %v1338_v28 = vsel %vm1337_vm14, 1, %v2586_v52 }
0x159b   :  { %1720 = vrot.lane.b32.xlu1 %v2429_v32, %s2587_s27  ;;  %v1558_v32 = vsel %vm1557_vm15, 1, %v2586_v52 }
0x159f   :  { %v2431_v33 = vpop.eup %2430 }
0x15a0   :  { %1666 = vrot.lane.b32.xlu0 %v2431_v33, %s2587_s27  ;;  %v1547_v33 = vsel %vm1546_vm0, 1, %v2586_v52 }
0x160c   :  { %v1719_v34 = vpop.permute.xlu0 %1718 }
0x160d   :  { %v1724_v35 = vmul.f32 %v2421_v55, %v1719_v34  ;;  %v1721_v36 = vpop.permute.xlu1 %1720 }
0x160e   :  { %v1725_v37 = vmul.f32 %v2423_v58, %v1721_v36 }
0x160f   :  { %v1740_v17 = vrot.slane %v1724_v35, 5 }
0x1610   :  { %v1741_v6 = vrot.slane %v1725_v37, 5 }
0x1612   :  { %v1667_v30 = vpop.permute.xlu0 %1666  ;;  %v1742_v40 = vsel %vm584_vm10, %v1740_v17, %v1741_v6 }
0x1613   :  { %v1669_v26 = vmul.f32 %v2425_v4, %v1667_v30  ;;  %1743 = vrot.lane.b32.xlu1 %v1742_v40, %s2585_s5 }
0x1615   :  { %v1727_v31 = vrot.slane %v1669_v26, 2 }
0x1617   :  { %1728 = vrot.lane.b32.xlu0 %v1727_v31, %s2588_s28 }
0x161b   :  { %1752 = vrot.lane.b32.xlu0 %v1751_v25, %s2589_s29 }
0x1685   :  { %v1744_v42 = vpop.permute.xlu1 %1743 }
0x1686   :  { %v3143_v43 = vsel %vm581_vm13, %v1744_v42, 0.0 }
0x1687   :  { %1757 = vrot.lane.b32.xlu1 %v3143_v43, %s2585_s5 }
0x1689   :  { %v1729_v44 = vpop.permute.xlu0 %1728 }
0x168a   :  { %v3154_v45 = vsel %vm605_vm12, %v1729_v44, %v3109_v59 }
0x168b   :  { %1734 = vrot.lane.b32.xlu1 %v1733_v9, %s2590_s30 }
0x168d   :  { %v1753_v5 = vpop.permute.xlu0 %1752 }
0x168e   :  { %v1755_v11 = vsel %vm581_vm13, %v1753_v5, 0.0 }
0x168f   :  { %1762 = vrot.lane.b32.xlu0 %v1755_v11, %s2585_s5 }
0x16f9   :  { %v1758_v46 = vpop.permute.xlu1 %1757 }
0x16fa   :  { %v3158_v47 = vsel %vm399_vm8, %v3154_v45, %v1758_v46 }
0x16fb   :  { %2182 = vmatmul.mubr.msk.f32.vlgmr.msra.gmra.mrb[16].mxu0 %vm111_vm1, %v3158_v47  ;;  %vm1330_vm1 = vcmp.eq.s32.totalorder %v1995_v0, 0 }
0x16fc   :  { %v1331_v34 = vsel %vm1330_vm1, 1, %v2586_v52 }
0x16fd   :  { %v1735_v57 = vpop.permute.xlu1 %1734 }
0x16fe   :  { %v1737_v3 = vsel %vm605_vm12, %v1735_v57, %v3121_v41 }
0x1701   :  { %v1763_v58 = vpop.permute.xlu0 %1762 }
0x17ce   :  { %v1837_v13 = vpop.f32.mrb[16].mxu0 }
0x17cf   :  { %v1838_v49 = vadd.f32 %v3014_v50, %v1837_v13  ;;  %v2183_v51 = vpop.f32.mrb[17].mxu0  ;;  %v1765_v50 = vsel %vm399_vm8, %v1737_v3, %v1763_v58 }
0x17d1   :  { %v1842_v53 = vrot.slane %v1838_v49, 1  ;;  %v1899_v59 = vadd.f32 %v1838_v49, %v3016_v54 }
0x17d3   :  { %v1844_v55 = vadd.f32 %v1842_v53, %v3019_v60  ;;  %v1845_v56 = vadd.f32 %v1842_v53, %v3022_v2  ;;  %v1861_v2 = vrot.slane %v1765_v50, 1  ;;  %v2007_v7 = vmul.f32 -1.442695, %v1899_v59 }
0x17d5   :  { %2432 = vtanh.f32 %v1844_v55  ;;  %v2005_v54 = vmul.f32 -1.442695, %v1844_v55  ;;  %v2006_v4 = vmul.f32 -1.442695, %v1845_v56 }
0x17d6   :  { %2434 = vtanh.f32 %v1845_v56 }
0x17d7   :  { %2436 = vtanh.f32 %v1899_v59 }
0x17d8   :  { %2438 = vpow2.f32 %v2005_v54 }
0x17d9   :  { %2440 = vpow2.f32 %v2006_v4 }
0x17da   :  { %2442 = vpow2.f32 %v2007_v7 }
0x17df   :  { %v2433_v61 = vpop.eup %2432 }
0x17e0   :  { %v2435_v38 = vpop.eup %2434  ;;  %1869 = vrot.lane.b32.xlu1 %v2433_v61, %s2584_s3 }
0x17e1   :  { %1871 = vrot.lane.b32.xlu0 %v2435_v38, %s2584_s3  ;;  %v2437_v60 = vpop.eup %2436 }
0x17e2   :  { %v2439_v39 = vpop.eup %2438 }
0x17e3   :  { %v2441_v41 = vpop.eup %2440  ;;  %v1852_v8 = vadd.f32 1.0, %v2439_v39 }
0x17e4   :  { %1912 = vrot.lane.b32.xlu1 %v2437_v60, %s2584_s3  ;;  %v2443_v10 = vpop.eup %2442  ;;  %v1853_v12 = vadd.f32 1.0, %v2441_v41 }
0x17e5   :  { %1862 = vrot.lane.b32.xlu0 %v1861_v2, %s2585_s5  ;;  %2444 = vrcp.f32 %v1852_v8  ;;  %v1903_v14 = vadd.f32 1.0, %v2443_v10 }
0x17e6   :  { %2446 = vrcp.f32 %v1853_v12 }
0x17e7   :  { %2448 = vrcp.f32 %v1903_v14 }
0x17ef   :  { %v3174_v15 = vpop.eup %2444 }
0x17f0   :  { %v2447_v29 = vpop.eup %2446 }
0x17f1   :  { %v2449_v21 = vpop.eup %2448 }
0x1852   :  { %v1870_v16 = vpop.permute.xlu1 %1869 }
0x1853   :  { %v1872_v1 = vpop.permute.xlu0 %1871  ;;  %v1875_v18 = vmul.f32 %v3174_v15, %v1870_v16 }
0x1854   :  { %v1876_v19 = vmul.f32 %v2447_v29, %v1872_v1 }
0x1855   :  { %1879 = vrot.lane.b32.xlu1 %v1875_v18, %s2585_s5 }
0x1856   :  { %1881 = vrot.lane.b32.xlu0 %v1876_v19, %s2585_s5  ;;  %v1913_v22 = vpop.permute.xlu1 %1912 }
0x1857   :  { %v1915_v25 = vmul.f32 %v2449_v21, %v1913_v22  ;;  %v1863_v35 = vpop.permute.xlu0 %1862 }
0x1858   :  { %v1865_v36 = vmul.f32 %v3174_v15, %v1863_v35  ;;  %v1866_v37 = vmul.f32 %v2447_v29, %v1863_v35 }
0x1859   :  { %1907 = vrot.lane.b32.xlu1 %v1765_v50, %s2591_s11 }
0x185a   :  { %1917 = vrot.lane.b32.xlu0 %v1915_v25, %s2585_s5 }
0x185d   :  { %1340 = vperm.xlu1 %2263, %v1338_v28  }
0x185e   :  { %1560 = vperm.xlu0 %2262, %v1558_v32  }
0x1861   :  { %1549 = vperm.xlu1 %2263, %v1547_v33  }
0x1862   :  { %1333 = vperm.xlu0 %2262, %v1331_v34  }
0x18c7   :  { %v1880_v17 = vpop.permute.xlu1 %1879 }
0x18c8   :  { %v1882_v6 = vpop.permute.xlu0 %1881  ;;  %v1885_v30 = vadd.f32 %v1880_v17, %v1865_v36 }
0x18c9   :  { %v1886_v40 = vadd.f32 %v1882_v6, %v1866_v37 }
0x18ca   :  { %2450 = vtanh.f32 %v1885_v30 }
0x18cb   :  { %2452 = vtanh.f32 %v1886_v40  ;;  %v1908_v26 = vpop.permute.xlu1 %1907 }
0x18cc   :  { %v1910_v31 = vmul.f32 %v2449_v21, %v1908_v26  ;;  %v1918_v42 = vpop.permute.xlu0 %1917 }
0x18ce   :  { %v1920_v44 = vadd.f32 %v1918_v42, %v1910_v31 }
0x18d0   :  { %2454 = vtanh.f32 %v1920_v44 }
0x18d4   :  { %v2451_v9 = vpop.eup %2450 }
0x18d5   :  { %v2453_v5 = vpop.eup %2452  ;;  %1891 = vrot.lane.b32.xlu1 %v2451_v9, %s2587_s27 }
0x18d6   :  { %1893 = vrot.lane.b32.xlu0 %v2453_v5, %s2587_s27 }
0x18da   :  { %v2455_v52 = vpop.eup %2454 }
0x18db   :  { %1923 = vrot.lane.b32.xlu1 %v2455_v52, %s2587_s27 }
0x18dc   :  { %v1341_v11 = vpop.permute.xlu1 %1340 }
0x18dd   :  { %v1561_v46 = vpop.permute.xlu0 %1560  ;;  %vm1342_vm3 = vcmp.eq.s32.totalorder %v1341_v11, 1 }
0x18de   :  { %vm1562_vm4 = vcmp.eq.s32.totalorder %v1561_v46, 1  ;;  %v1343_v13 = vsel %vm1342_vm3, %v3044_v63, 0.0 }
0x18df   :  { %v1563_v51 = vsel %vm1562_vm4, %v3094_v20, %v1343_v13 }
0x18e0   :  { %v1550_v49 = vpop.permute.xlu1 %1549 }
0x18e1   :  { %v1334_v53 = vpop.permute.xlu0 %1333  ;;  %vm1551_vm6 = vcmp.eq.s32.totalorder %v1550_v49, 1 }
0x18e2   :  { %vm1335_vm9 = vcmp.eq.s32.totalorder %v1334_v53, 1  ;;  %v1767_v55 = vsel %vm1551_vm6, %v3143_v43, %v1563_v51 }
0x18e3   :  { %v1336_v56 = vsel %vm1335_vm9, %v3040_v62, 0.0  ;;  %1939 = vrot.lane.b32.xlu0 %v1767_v55, %s2590_s30 }
0x18e4   :  { %1553 = vrot.lane.b32.xlu1 %v1336_v56, %s2588_s28 }
0x1947   :  { %v1892_v59 = vpop.permute.xlu1 %1891 }
0x1948   :  { %v1894_v57 = vpop.permute.xlu0 %1893  ;;  %v1897_v63 = vmul.f32 %v3174_v15, %v1892_v59 }
0x1949   :  { %v1898_v58 = vmul.f32 %v2447_v29, %v1894_v57 }
0x194a   :  { %v1929_v61 = vrot.slane %v1897_v63, 7 }
0x194b   :  { %v1930_v20 = vrot.slane %v1898_v58, 7 }
0x194d   :  { %v1931_v3 = vsel %vm374_vm2, %v1929_v61, %v1930_v20  ;;  %v1924_v38 = vpop.permute.xlu1 %1923  ;;  %vm1948_vm2 = vcmask 258048  }
0x194e   :  { %1932 = vrot.lane.b32.xlu0 %v1931_v3, %s2588_s28  ;;  %v1926_v43 = vmul.f32 %v2449_v21, %v1924_v38 }
0x1950   :  { %v1936_v62 = vsel %vm364_vm5, %v1926_v43, 0.0 }
0x1955   :  { %v1940_v50 = vpop.permute.xlu0 %1939 }
0x1956   :  { %v1942_v60 = vsel %vm1335_vm9, %v1936_v62, %v1940_v50  ;;  %v1554_v2 = vpop.permute.xlu1 %1553 }
0x1957   :  { %1944 = vrot.lane.b32.xlu1 %v1942_v60, %s2587_s27  ;;  %v1556_v4 = vsel %vm1551_vm6, %v3105_v27, %v1554_v2 }
0x1958   :  { %v1766_v24 = vsel %vm1562_vm4, %v3154_v45, %v1556_v4 }
0x19c0   :  { %v1933_v54 = vpop.permute.xlu0 %1932 }
0x19c1   :  { %v1935_v7 = vsel %vm371_vm7, %v1933_v54, %v3158_v47 }
0x19c2   :  { %v1937_v39 = vsel %vm1342_vm3, %v1935_v7, %v1766_v24 }
0x19c9   :  { %v1945_v41 = vpop.permute.xlu1 %1944 }
0x19ca   :  { %v1947_v8 = vsel %vm399_vm8, %v1937_v39, %v1945_v41 }
0x19cb   :  { %1949 = vst.msk [vmem:[#allocation12] sm:$0x1f] %vm1948_vm2, %v1947_v8 }
0x19cc   :  { %2556 = shalt.err (!%p2553_p8)
}
0x19cd   :  { %s2557_s26 = scalar_lea.hbm %s3240_s10, 128 }
0x19ce   :  { %p2558_p9 = scmp.ne.s32.totalorder %s3240_s10, %s2557_s26  ;;  %p2561_p10 = scmp.lt.u32.totalorder %s2557_s26, %s3240_s10 }
0x19d0   :  { %p2563_p11 = pnand %p2561_p10, %p2558_p9 }
0x19d2   :  { %2566 = shalt.err (!%p2563_p11)
}
0x19d3   :  { %1959 = dma.vmem_to_hbm [thread:$0]  %s1957_s4, 128, %s3240_s10, [#allocation6]  }
0x19d4   :  { %2573 = dma.done.wait [#allocation6], 128  }
0x19d5   :  { %2574 = vsyncadd [#allocation6], 4294967168 }
0x19d6   :  { %1963 = vsyncpa [#allocation5], 1 }
0x19d7   :  { %1964 = vsyncpa [#allocation8], 1 }
0x19d8   :  { %1965 = vsyncpa [#allocation11], 1 }
0x19d9   :  { %1966 = vsyncpa [#allocation6], 1 }

</bundles_post_ra>
